<compile_context>
chip_gen: v7x
topology: tpu7x:2x2x1
jax: 0.10.0
libtpu: 0.0.40
codegen_flags: <defaults>
</compile_context>

<pallas_src>
import functools

import numpy as np
import jax
import jax.numpy as jnp
from jax import lax
from jax.experimental import pallas as pl
from jax.experimental.pallas import tpu as pltpu

# Full f32 matmul precision everywhere (kernel trace + JAX reference) so the
# correctness check is not polluted by bf16 default-precision matmuls.
jax.config.update("jax_default_matmul_precision", "float32")


def _psdnet_kernel(x_ref, w1_ref, b1_ref, w2_ref, b2_ref, w3_ref, b3_ref,
                   row_ref, col_ref, out_ref, *, expm_scaling, expm_order,
                   leaky_slope):
    n = row_ref.shape[0]

    # ---------------- MLP: Linear -> LeakyReLU -> Linear -> LeakyReLU -> Linear -> Tanh
    xb = x_ref[0]                                                     # (1, in_dim)
    h = jnp.dot(xb, w1_ref[...], preferred_element_type=jnp.float32) + b1_ref[...]
    h = jnp.where(h > 0, h, leaky_slope * h)
    h = jnp.dot(h, w2_ref[...], preferred_element_type=jnp.float32) + b2_ref[...]
    h = jnp.where(h > 0, h, leaky_slope * h)
    ldata = jnp.tanh(
        jnp.dot(h, w3_ref[...], preferred_element_type=jnp.float32) + b3_ref[...]
    )                                                                  # (1, chol)

    # ---------------- fill_tril + symmetrize, gather-free:
    # row_ref[i,k] = 1 iff tril-index k is in row i ; col_ref[j,k] = 1 iff it is in col j
    # L[i,j]   = sum_k row[i,k] * ldata[k] * col[j,k]
    # L^T[i,j] = sum_k col[i,k] * ldata[k] * row[j,k]
    dn = (((1,), (1,)), ((), ()))            # contract the chol axis (A @ B^T form)
    r_scaled = row_ref[...] * ldata          # (n, chol), sublane-broadcast of (1, chol)
    c_scaled = col_ref[...] * ldata
    L = lax.dot_general(r_scaled, col_ref[...], dn, preferred_element_type=jnp.float32)
    Lt = lax.dot_general(c_scaled, row_ref[...], dn, preferred_element_type=jnp.float32)
    Q = L + Lt                               # symmetric, entries bounded by tanh

    # ---------------- out = V diag(sqrt(softmax(2w))) V^T  ==  expm(Q) / ||expm(Q)||_F
    rows = lax.broadcasted_iota(jnp.int32, (n, n), 0)
    cols = lax.broadcasted_iota(jnp.int32, (n, n), 1)
    eye = (rows == cols).astype(jnp.float32)

    A = Q * (1.0 / float(2 ** expm_scaling))            # scaling ...
    T = eye
    for k in range(expm_order, 0, -1):                  # Horner Taylor, static unroll
        T = eye + jnp.dot(A, T, preferred_element_type=jnp.float32) * (1.0 / float(k))
    for _ in range(expm_scaling):                       # ... and squaring
        T = jnp.dot(T, T, preferred_element_type=jnp.float32)

    fro2 = jnp.sum(T * T, keepdims=True)                # (1, 1)
    out = T * lax.rsqrt(fro2)                           # Frobenius normalization (EUP)
    out_ref[...] = out[None]


def psdnet_forward(x, params, row_sel, col_sel, *, leaky_slope=0.01):
    """x: (B, in_dim) f32. params: [(W1,b1),(W2,b2),(W3,b3)] with W (in,out), b (1,out).
    row_sel/col_sel: (out_dim, chol) constant 0/1 selector matrices (tril row-major order).
    Returns (B, out_dim, out_dim) SPD matrices."""
    B, in_dim = x.shape
    n, chol = row_sel.shape
    (w1, b1), (w2, b2), (w3, b3) = params

    # Static expm parameters: |off-diag| < 1, |diag| < 2  =>  ||Qsym||_inf <= n + 1.
    bound = float(n + 1)
    theta = 0.5
    scaling = max(0, int(np.ceil(np.log2(bound / theta))))
    order = 10

    kernel = functools.partial(
        _psdnet_kernel, expm_scaling=scaling, expm_order=order,
        leaky_slope=float(leaky_slope))

    def const_spec(arr):
        nd = arr.ndim
        return pl.BlockSpec(arr.shape, lambda b, _nd=nd: (0,) * _nd)

    x3 = x.reshape(B, 1, in_dim).astype(jnp.float32)

    return pl.pallas_call(
        kernel,
        out_shape=jax.ShapeDtypeStruct((B, n, n), jnp.float32),
        grid=(B,),
        in_specs=[
            pl.BlockSpec((1, 1, in_dim), lambda b: (b, 0, 0)),
            const_spec(w1), const_spec(b1),
            const_spec(w2), const_spec(b2),
            const_spec(w3), const_spec(b3),
            const_spec(row_sel), const_spec(col_sel),
        ],
        out_specs=pl.BlockSpec((1, n, n), lambda b: (b, 0, 0)),
        compiler_params=pltpu.CompilerParams(dimension_semantics=("parallel",)),
    )(x3, w1, b1, w2, b2, w3, b3, row_sel, col_sel)


if __name__ == "__main__":
    in_dim, out_dim, batch = 10, 8, 2
    hidden = [20, 20]                                     # module default n_layers[:-1]
    chol = out_dim + out_dim * (out_dim - 1) // 2         # 36

    key = jax.random.PRNGKey(0)
    keys = jax.random.split(key, 7)

    def init_linear(kw, kb, fan_in, fan_out):
        lim = 1.0 / fan_in                                # nn.init.uniform_(p, -1/in_feat, 1/in_feat)
        W = jax.random.uniform(kw, (fan_in, fan_out), jnp.float32, -lim, lim)
        b = jax.random.uniform(kb, (1, fan_out), jnp.float32, -lim, lim)
        return W, b

    w1, b1 = init_linear(keys[0], keys[1], in_dim, hidden[0])
    w2, b2 = init_linear(keys[2], keys[3], hidden[0], hidden[1])
    w3, b3 = init_linear(keys[4], keys[5], hidden[1], chol)
    x = jax.random.uniform(keys[6], (batch, in_dim), jnp.float32, -1.0, 1.0)

    # fill_tril layout convention: row-major lower-triangular order (np.tril_indices).
    ri, ci = np.tril_indices(out_dim)
    row_sel = np.zeros((out_dim, chol), np.float32)
    col_sel = np.zeros((out_dim, chol), np.float32)
    row_sel[ri, np.arange(chol)] = 1.0
    col_sel[ci, np.arange(chol)] = 1.0
    row_sel = jnp.asarray(row_sel)
    col_sel = jnp.asarray(col_sel)

    out = psdnet_forward(x, [(w1, b1), (w2, b2), (w3, b3)], row_sel, col_sel)
    out = jax.block_until_ready(out)
    assert out.shape == (batch, out_dim, out_dim)

    # -------- reference: plain JAX, mirrors the PyTorch forward (symeig path) --------
    hp = jax.lax.Precision.HIGHEST
    h = jnp.dot(x, w1, precision=hp) + b1
    h = jnp.where(h > 0, h, 0.01 * h)
    h = jnp.dot(h, w2, precision=hp) + b2
    h = jnp.where(h > 0, h, 0.01 * h)
    ldata = jnp.tanh(jnp.dot(h, w3, precision=hp) + b3)
    L = jnp.zeros((batch, out_dim, out_dim), jnp.float32).at[:, ri, ci].set(ldata)
    Qs = L + jnp.swapaxes(L, -1, -2)
    evals, evecs = jnp.linalg.eigh(Qs)
    s = jnp.sqrt(jax.nn.softmax(2.0 * evals, axis=-1))    # sqrt(softmax(exp(w)^2))
    ref = jnp.matmul(evecs, s[..., :, None] * jnp.linalg.inv(evecs), precision=hp)

    err = float(jnp.max(jnp.abs(out - ref)))
    assert err < 1e-3, f"max abs error vs symeig reference: {err}"
    print("KERNEL_OK")
</pallas_src>

<mosaic_0001>
module attributes {stable_mosaic.version = 11 : i64} {
  func.func @_psdnet_kernel(%arg0: i32, %arg1: memref<1x1x10xf32, #tpu.memory_space<vmem>>, %arg2: memref<10x20xf32, #tpu.memory_space<vmem>>, %arg3: memref<1x20xf32, #tpu.memory_space<vmem>>, %arg4: memref<20x20xf32, #tpu.memory_space<vmem>>, %arg5: memref<1x20xf32, #tpu.memory_space<vmem>>, %arg6: memref<20x36xf32, #tpu.memory_space<vmem>>, %arg7: memref<1x36xf32, #tpu.memory_space<vmem>>, %arg8: memref<8x36xf32, #tpu.memory_space<vmem>>, %arg9: memref<8x36xf32, #tpu.memory_space<vmem>>, %arg10: memref<1x8x8xf32, #tpu.memory_space<vmem>>) attributes {dimension_semantics = [#tpu.dimension_semantics<parallel>], iteration_bounds = array<i64: 2>, scalar_prefetch = 0 : i64, scratch_operands = 0 : i64, tpu.core_type = #tpu.core_type<tc>, window_params = [{transform_indices = @transform_0, window_bounds = array<i64: 1, 1, 10>}, {pipeline_mode = #tpu.pipeline_mode<synchronous>, transform_indices = @transform_1, window_bounds = array<i64: 10, 20>}, {pipeline_mode = #tpu.pipeline_mode<synchronous>, transform_indices = @transform_2, window_bounds = array<i64: 1, 20>}, {pipeline_mode = #tpu.pipeline_mode<synchronous>, transform_indices = @transform_3, window_bounds = array<i64: 20, 20>}, {pipeline_mode = #tpu.pipeline_mode<synchronous>, transform_indices = @transform_4, window_bounds = array<i64: 1, 20>}, {pipeline_mode = #tpu.pipeline_mode<synchronous>, transform_indices = @transform_5, window_bounds = array<i64: 20, 36>}, {pipeline_mode = #tpu.pipeline_mode<synchronous>, transform_indices = @transform_6, window_bounds = array<i64: 1, 36>}, {pipeline_mode = #tpu.pipeline_mode<synchronous>, transform_indices = @transform_7, window_bounds = array<i64: 8, 36>}, {pipeline_mode = #tpu.pipeline_mode<synchronous>, transform_indices = @transform_8, window_bounds = array<i64: 8, 36>}, {transform_indices = @transform_9, window_bounds = array<i64: 1, 8, 8>}]} {
    %c0 = arith.constant 0 : index
    %c0_0 = arith.constant 0 : index
    %c0_1 = arith.constant 0 : index
    %0 = vector.load %arg1[%c0, %c0_0, %c0_1] : memref<1x1x10xf32, #tpu.memory_space<vmem>>, vector<1x1x10xf32>
    %1 = vector.shape_cast %0 : vector<1x1x10xf32> to vector<1x10xf32>
    %c0_2 = arith.constant 0 : index
    %c0_3 = arith.constant 0 : index
    %2 = vector.load %arg2[%c0_2, %c0_3] : memref<10x20xf32, #tpu.memory_space<vmem>>, vector<10x20xf32>
    %cst = arith.constant dense<0.000000e+00> : vector<1x20xf32>
    %3 = tpu.matmul %1, %2, %cst {dimension_numbers = #tpu.dot_dimension_numbers<[1], [0], [0], [1], [0, 0, 1, 1], [], []>, precision = #tpu.contract_precision<fp32>} : vector<1x10xf32>, vector<10x20xf32>, vector<1x20xf32> -> vector<1x20xf32>
    %c0_4 = arith.constant 0 : index
    %c0_5 = arith.constant 0 : index
    %4 = vector.load %arg3[%c0_4, %c0_5] : memref<1x20xf32, #tpu.memory_space<vmem>>, vector<1x20xf32>
    %5 = arith.addf %3, %4 : vector<1x20xf32>
    %cst_6 = arith.constant 0.000000e+00 : f32
    %6 = vector.broadcast %cst_6 : f32 to vector<1x20xf32>
    %7 = arith.cmpf ogt, %5, %6 : vector<1x20xf32>
    %cst_7 = arith.constant 0.00999999977 : f32
    %8 = vector.broadcast %cst_7 : f32 to vector<1x20xf32>
    %9 = arith.mulf %8, %5 : vector<1x20xf32>
    %10 = arith.select %7, %5, %9 : vector<1x20xi1>, vector<1x20xf32>
    %c0_8 = arith.constant 0 : index
    %c0_9 = arith.constant 0 : index
    %11 = vector.load %arg4[%c0_8, %c0_9] : memref<20x20xf32, #tpu.memory_space<vmem>>, vector<20x20xf32>
    %cst_10 = arith.constant dense<0.000000e+00> : vector<1x20xf32>
    %12 = tpu.matmul %10, %11, %cst_10 {dimension_numbers = #tpu.dot_dimension_numbers<[1], [0], [0], [1], [0, 0, 1, 1], [], []>, precision = #tpu.contract_precision<fp32>} : vector<1x20xf32>, vector<20x20xf32>, vector<1x20xf32> -> vector<1x20xf32>
    %c0_11 = arith.constant 0 : index
    %c0_12 = arith.constant 0 : index
    %13 = vector.load %arg5[%c0_11, %c0_12] : memref<1x20xf32, #tpu.memory_space<vmem>>, vector<1x20xf32>
    %14 = arith.addf %12, %13 : vector<1x20xf32>
    %cst_13 = arith.constant 0.000000e+00 : f32
    %15 = vector.broadcast %cst_13 : f32 to vector<1x20xf32>
    %16 = arith.cmpf ogt, %14, %15 : vector<1x20xf32>
    %cst_14 = arith.constant 0.00999999977 : f32
    %17 = vector.broadcast %cst_14 : f32 to vector<1x20xf32>
    %18 = arith.mulf %17, %14 : vector<1x20xf32>
    %19 = arith.select %16, %14, %18 : vector<1x20xi1>, vector<1x20xf32>
    %c0_15 = arith.constant 0 : index
    %c0_16 = arith.constant 0 : index
    %20 = vector.load %arg6[%c0_15, %c0_16] : memref<20x36xf32, #tpu.memory_space<vmem>>, vector<20x36xf32>
    %cst_17 = arith.constant dense<0.000000e+00> : vector<1x36xf32>
    %21 = tpu.matmul %19, %20, %cst_17 {dimension_numbers = #tpu.dot_dimension_numbers<[1], [0], [0], [1], [0, 0, 1, 1], [], []>, precision = #tpu.contract_precision<fp32>} : vector<1x20xf32>, vector<20x36xf32>, vector<1x36xf32> -> vector<1x36xf32>
    %c0_18 = arith.constant 0 : index
    %c0_19 = arith.constant 0 : index
    %22 = vector.load %arg7[%c0_18, %c0_19] : memref<1x36xf32, #tpu.memory_space<vmem>>, vector<1x36xf32>
    %23 = arith.addf %21, %22 : vector<1x36xf32>
    %24 = math.tanh %23 : vector<1x36xf32>
    %c0_20 = arith.constant 0 : index
    %c0_21 = arith.constant 0 : index
    %25 = vector.load %arg8[%c0_20, %c0_21] : memref<8x36xf32, #tpu.memory_space<vmem>>, vector<8x36xf32>
    %26 = vector.broadcast %24 : vector<1x36xf32> to vector<8x36xf32>
    %27 = arith.mulf %25, %26 : vector<8x36xf32>
    %c0_22 = arith.constant 0 : index
    %c0_23 = arith.constant 0 : index
    %28 = vector.load %arg9[%c0_22, %c0_23] : memref<8x36xf32, #tpu.memory_space<vmem>>, vector<8x36xf32>
    %29 = vector.broadcast %24 : vector<1x36xf32> to vector<8x36xf32>
    %30 = arith.mulf %28, %29 : vector<8x36xf32>
    %c0_24 = arith.constant 0 : index
    %c0_25 = arith.constant 0 : index
    %31 = vector.load %arg9[%c0_24, %c0_25] : memref<8x36xf32, #tpu.memory_space<vmem>>, vector<8x36xf32>
    %cst_26 = arith.constant dense<0.000000e+00> : vector<8x8xf32>
    %32 = tpu.matmul %27, %31, %cst_26 {dimension_numbers = #tpu.dot_dimension_numbers<[1], [1], [0], [0], [0, 0, 1, 0], [], []>, precision = #tpu.contract_precision<fp32>} : vector<8x36xf32>, vector<8x36xf32>, vector<8x8xf32> -> vector<8x8xf32>
    %c0_27 = arith.constant 0 : index
    %c0_28 = arith.constant 0 : index
    %33 = vector.load %arg8[%c0_27, %c0_28] : memref<8x36xf32, #tpu.memory_space<vmem>>, vector<8x36xf32>
    %cst_29 = arith.constant dense<0.000000e+00> : vector<8x8xf32>
    %34 = tpu.matmul %30, %33, %cst_29 {dimension_numbers = #tpu.dot_dimension_numbers<[1], [1], [0], [0], [0, 0, 1, 0], [], []>, precision = #tpu.contract_precision<fp32>} : vector<8x36xf32>, vector<8x36xf32>, vector<8x8xf32> -> vector<8x8xf32>
    %35 = arith.addf %32, %34 : vector<8x8xf32>
    %36 = tpu.iota {dimensions = array<i32: 0>} : vector<8x8xi32>
    %37 = tpu.iota {dimensions = array<i32: 1>} : vector<8x8xi32>
    %38 = arith.cmpi eq, %36, %37 : vector<8x8xi32>
    %39 = arith.extui %38 : vector<8x8xi1> to vector<8x8xi32>
    %40 = arith.sitofp %39 : vector<8x8xi32> to vector<8x8xf32>
    %cst_30 = arith.constant 3.125000e-02 : f32
    %41 = vector.broadcast %cst_30 : f32 to vector<8x8xf32>
    %42 = arith.mulf %35, %41 : vector<8x8xf32>
    %cst_31 = arith.constant dense<0.000000e+00> : vector<8x8xf32>
    %43 = tpu.matmul %42, %40, %cst_31 {dimension_numbers = #tpu.dot_dimension_numbers<[1], [0], [0], [1], [0, 0, 1, 1], [], []>, precision = #tpu.contract_precision<fp32>} : vector<8x8xf32>, vector<8x8xf32>, vector<8x8xf32> -> vector<8x8xf32>
    %cst_32 = arith.constant 1.000000e-01 : f32
    %44 = vector.broadcast %cst_32 : f32 to vector<8x8xf32>
    %45 = arith.mulf %43, %44 : vector<8x8xf32>
    %46 = arith.addf %40, %45 : vector<8x8xf32>
    %cst_33 = arith.constant dense<0.000000e+00> : vector<8x8xf32>
    %47 = tpu.matmul %42, %46, %cst_33 {dimension_numbers = #tpu.dot_dimension_numbers<[1], [0], [0], [1], [0, 0, 1, 1], [], []>, precision = #tpu.contract_precision<fp32>} : vector<8x8xf32>, vector<8x8xf32>, vector<8x8xf32> -> vector<8x8xf32>
    %cst_34 = arith.constant 0.111111112 : f32
    %48 = vector.broadcast %cst_34 : f32 to vector<8x8xf32>
    %49 = arith.mulf %47, %48 : vector<8x8xf32>
    %50 = arith.addf %40, %49 : vector<8x8xf32>
    %cst_35 = arith.constant dense<0.000000e+00> : vector<8x8xf32>
    %51 = tpu.matmul %42, %50, %cst_35 {dimension_numbers = #tpu.dot_dimension_numbers<[1], [0], [0], [1], [0, 0, 1, 1], [], []>, precision = #tpu.contract_precision<fp32>} : vector<8x8xf32>, vector<8x8xf32>, vector<8x8xf32> -> vector<8x8xf32>
    %cst_36 = arith.constant 1.250000e-01 : f32
    %52 = vector.broadcast %cst_36 : f32 to vector<8x8xf32>
    %53 = arith.mulf %51, %52 : vector<8x8xf32>
    %54 = arith.addf %40, %53 : vector<8x8xf32>
    %cst_37 = arith.constant dense<0.000000e+00> : vector<8x8xf32>
    %55 = tpu.matmul %42, %54, %cst_37 {dimension_numbers = #tpu.dot_dimension_numbers<[1], [0], [0], [1], [0, 0, 1, 1], [], []>, precision = #tpu.contract_precision<fp32>} : vector<8x8xf32>, vector<8x8xf32>, vector<8x8xf32> -> vector<8x8xf32>
    %cst_38 = arith.constant 0.142857149 : f32
    %56 = vector.broadcast %cst_38 : f32 to vector<8x8xf32>
    %57 = arith.mulf %55, %56 : vector<8x8xf32>
    %58 = arith.addf %40, %57 : vector<8x8xf32>
    %cst_39 = arith.constant dense<0.000000e+00> : vector<8x8xf32>
    %59 = tpu.matmul %42, %58, %cst_39 {dimension_numbers = #tpu.dot_dimension_numbers<[1], [0], [0], [1], [0, 0, 1, 1], [], []>, precision = #tpu.contract_precision<fp32>} : vector<8x8xf32>, vector<8x8xf32>, vector<8x8xf32> -> vector<8x8xf32>
    %cst_40 = arith.constant 0.166666672 : f32
    %60 = vector.broadcast %cst_40 : f32 to vector<8x8xf32>
    %61 = arith.mulf %59, %60 : vector<8x8xf32>
    %62 = arith.addf %40, %61 : vector<8x8xf32>
    %cst_41 = arith.constant dense<0.000000e+00> : vector<8x8xf32>
    %63 = tpu.matmul %42, %62, %cst_41 {dimension_numbers = #tpu.dot_dimension_numbers<[1], [0], [0], [1], [0, 0, 1, 1], [], []>, precision = #tpu.contract_precision<fp32>} : vector<8x8xf32>, vector<8x8xf32>, vector<8x8xf32> -> vector<8x8xf32>
    %cst_42 = arith.constant 2.000000e-01 : f32
    %64 = vector.broadcast %cst_42 : f32 to vector<8x8xf32>
    %65 = arith.mulf %63, %64 : vector<8x8xf32>
    %66 = arith.addf %40, %65 : vector<8x8xf32>
    %cst_43 = arith.constant dense<0.000000e+00> : vector<8x8xf32>
    %67 = tpu.matmul %42, %66, %cst_43 {dimension_numbers = #tpu.dot_dimension_numbers<[1], [0], [0], [1], [0, 0, 1, 1], [], []>, precision = #tpu.contract_precision<fp32>} : vector<8x8xf32>, vector<8x8xf32>, vector<8x8xf32> -> vector<8x8xf32>
    %cst_44 = arith.constant 2.500000e-01 : f32
    %68 = vector.broadcast %cst_44 : f32 to vector<8x8xf32>
    %69 = arith.mulf %67, %68 : vector<8x8xf32>
    %70 = arith.addf %40, %69 : vector<8x8xf32>
    %cst_45 = arith.constant dense<0.000000e+00> : vector<8x8xf32>
    %71 = tpu.matmul %42, %70, %cst_45 {dimension_numbers = #tpu.dot_dimension_numbers<[1], [0], [0], [1], [0, 0, 1, 1], [], []>, precision = #tpu.contract_precision<fp32>} : vector<8x8xf32>, vector<8x8xf32>, vector<8x8xf32> -> vector<8x8xf32>
    %cst_46 = arith.constant 0.333333343 : f32
    %72 = vector.broadcast %cst_46 : f32 to vector<8x8xf32>
    %73 = arith.mulf %71, %72 : vector<8x8xf32>
    %74 = arith.addf %40, %73 : vector<8x8xf32>
    %cst_47 = arith.constant dense<0.000000e+00> : vector<8x8xf32>
    %75 = tpu.matmul %42, %74, %cst_47 {dimension_numbers = #tpu.dot_dimension_numbers<[1], [0], [0], [1], [0, 0, 1, 1], [], []>, precision = #tpu.contract_precision<fp32>} : vector<8x8xf32>, vector<8x8xf32>, vector<8x8xf32> -> vector<8x8xf32>
    %cst_48 = arith.constant 5.000000e-01 : f32
    %76 = vector.broadcast %cst_48 : f32 to vector<8x8xf32>
    %77 = arith.mulf %75, %76 : vector<8x8xf32>
    %78 = arith.addf %40, %77 : vector<8x8xf32>
    %cst_49 = arith.constant dense<0.000000e+00> : vector<8x8xf32>
    %79 = tpu.matmul %42, %78, %cst_49 {dimension_numbers = #tpu.dot_dimension_numbers<[1], [0], [0], [1], [0, 0, 1, 1], [], []>, precision = #tpu.contract_precision<fp32>} : vector<8x8xf32>, vector<8x8xf32>, vector<8x8xf32> -> vector<8x8xf32>
    %cst_50 = arith.constant 1.000000e+00 : f32
    %80 = vector.broadcast %cst_50 : f32 to vector<8x8xf32>
    %81 = arith.mulf %79, %80 : vector<8x8xf32>
    %82 = arith.addf %40, %81 : vector<8x8xf32>
    %cst_51 = arith.constant dense<0.000000e+00> : vector<8x8xf32>
    %83 = tpu.matmul %82, %82, %cst_51 {dimension_numbers = #tpu.dot_dimension_numbers<[1], [0], [0], [1], [0, 0, 1, 1], [], []>, precision = #tpu.contract_precision<fp32>} : vector<8x8xf32>, vector<8x8xf32>, vector<8x8xf32> -> vector<8x8xf32>
    %cst_52 = arith.constant dense<0.000000e+00> : vector<8x8xf32>
    %84 = tpu.matmul %83, %83, %cst_52 {dimension_numbers = #tpu.dot_dimension_numbers<[1], [0], [0], [1], [0, 0, 1, 1], [], []>, precision = #tpu.contract_precision<fp32>} : vector<8x8xf32>, vector<8x8xf32>, vector<8x8xf32> -> vector<8x8xf32>
    %cst_53 = arith.constant dense<0.000000e+00> : vector<8x8xf32>
    %85 = tpu.matmul %84, %84, %cst_53 {dimension_numbers = #tpu.dot_dimension_numbers<[1], [0], [0], [1], [0, 0, 1, 1], [], []>, precision = #tpu.contract_precision<fp32>} : vector<8x8xf32>, vector<8x8xf32>, vector<8x8xf32> -> vector<8x8xf32>
    %cst_54 = arith.constant dense<0.000000e+00> : vector<8x8xf32>
    %86 = tpu.matmul %85, %85, %cst_54 {dimension_numbers = #tpu.dot_dimension_numbers<[1], [0], [0], [1], [0, 0, 1, 1], [], []>, precision = #tpu.contract_precision<fp32>} : vector<8x8xf32>, vector<8x8xf32>, vector<8x8xf32> -> vector<8x8xf32>
    %cst_55 = arith.constant dense<0.000000e+00> : vector<8x8xf32>
    %87 = tpu.matmul %86, %86, %cst_55 {dimension_numbers = #tpu.dot_dimension_numbers<[1], [0], [0], [1], [0, 0, 1, 1], [], []>, precision = #tpu.contract_precision<fp32>} : vector<8x8xf32>, vector<8x8xf32>, vector<8x8xf32> -> vector<8x8xf32>
    %88 = arith.mulf %87, %87 : vector<8x8xf32>
    %89 = vector.shape_cast %88 : vector<8x8xf32> to vector<1x8x8xf32>
    %cst_56 = arith.constant dense<0.000000e+00> : vector<1xf32>
    %90 = vector.multi_reduction <add>, %89, %cst_56 [1, 2] : vector<1x8x8xf32> to vector<1xf32>
    %91 = vector.shape_cast %90 : vector<1xf32> to vector<1x1x1xf32>
    %92 = vector.extract %91[0, 0, 0] : f32 from vector<1x1x1xf32>
    %93 = vector.broadcast %92 : f32 to vector<1x1xf32>
    %94 = math.rsqrt %93 : vector<1x1xf32>
    %95 = vector.broadcast %94 : vector<1x1xf32> to vector<8x8xf32>
    %96 = arith.mulf %87, %95 : vector<8x8xf32>
    %97 = vector.shape_cast %96 : vector<8x8xf32> to vector<1x8x8xf32>
    %c0_57 = arith.constant 0 : index
    %c0_58 = arith.constant 0 : index
    %c0_59 = arith.constant 0 : index
    %98 = vector.load %arg10[%c0_57, %c0_58, %c0_59] : memref<1x8x8xf32, #tpu.memory_space<vmem>>, vector<1x8x8xf32>
    tpu.vector_store %arg10[%c0_57, %c0_58, %c0_59], %97 {strides = array<i32>} : memref<1x8x8xf32, #tpu.memory_space<vmem>>, vector<1x8x8xf32>,
    return
  }
  func.func @transform_0(%arg0: i32) -> (i32, i32, i32) {
    %c0_i32 = arith.constant 0 : i32
    %c0_i32_0 = arith.constant 0 : i32
    %c0_i32_1 = arith.constant 0 : i32
    return %arg0, %c0_i32, %c0_i32_0 : i32, i32, i32
  }
  func.func @transform_1(%arg0: i32) -> (i32, i32) {
    %c0_i32 = arith.constant 0 : i32
    %c0_i32_0 = arith.constant 0 : i32
    %c0_i32_1 = arith.constant 0 : i32
    return %c0_i32, %c0_i32_0 : i32, i32
  }
  func.func @transform_2(%arg0: i32) -> (i32, i32) {
    %c0_i32 = arith.constant 0 : i32
    %c0_i32_0 = arith.constant 0 : i32
    %c0_i32_1 = arith.constant 0 : i32
    return %c0_i32, %c0_i32_0 : i32, i32
  }
  func.func @transform_3(%arg0: i32) -> (i32, i32) {
    %c0_i32 = arith.constant 0 : i32
    %c0_i32_0 = arith.constant 0 : i32
    %c0_i32_1 = arith.constant 0 : i32
    return %c0_i32, %c0_i32_0 : i32, i32
  }
  func.func @transform_4(%arg0: i32) -> (i32, i32) {
    %c0_i32 = arith.constant 0 : i32
    %c0_i32_0 = arith.constant 0 : i32
    %c0_i32_1 = arith.constant 0 : i32
    return %c0_i32, %c0_i32_0 : i32, i32
  }
  func.func @transform_5(%arg0: i32) -> (i32, i32) {
    %c0_i32 = arith.constant 0 : i32
    %c0_i32_0 = arith.constant 0 : i32
    %c0_i32_1 = arith.constant 0 : i32
    return %c0_i32, %c0_i32_0 : i32, i32
  }
  func.func @transform_6(%arg0: i32) -> (i32, i32) {
    %c0_i32 = arith.constant 0 : i32
    %c0_i32_0 = arith.constant 0 : i32
    %c0_i32_1 = arith.constant 0 : i32
    return %c0_i32, %c0_i32_0 : i32, i32
  }
  func.func @transform_7(%arg0: i32) -> (i32, i32) {
    %c0_i32 = arith.constant 0 : i32
    %c0_i32_0 = arith.constant 0 : i32
    %c0_i32_1 = arith.constant 0 : i32
    return %c0_i32, %c0_i32_0 : i32, i32
  }
  func.func @transform_8(%arg0: i32) -> (i32, i32) {
    %c0_i32 = arith.constant 0 : i32
    %c0_i32_0 = arith.constant 0 : i32
    %c0_i32_1 = arith.constant 0 : i32
    return %c0_i32, %c0_i32_0 : i32, i32
  }
  func.func @transform_9(%arg0: i32) -> (i32, i32, i32) {
    %c0_i32 = arith.constant 0 : i32
    %c0_i32_0 = arith.constant 0 : i32
    %c0_i32_1 = arith.constant 0 : i32
    return %arg0, %c0_i32, %c0_i32_0 : i32, i32, i32
  }
}

</mosaic_0001>

<bundles_post_ra>
// kernel: tpu_custom_call.1
= control target key start
LH: loop header
LB: loop body
LE: loop exit
PB: predicated region body
PF: predicated region fallthrough
CT: control target
= control target key end

     0   :  { %s11913_s0 = inlined_call_operand.hbm [shape: f32[2,1,10], index: 0, kind: input, shape index: {}]   ;;  %s11914_s1 = inlined_call_operand.hbm [shape: f32[10,20], index: 1, kind: input, shape index: {}]   ;;  %s11915_s2 = inlined_call_operand.vmem [shape: f32[1,20], index: 2, kind: input, shape index: {}]   ;;  %s11916_s3 = inlined_call_operand.hbm [shape: f32[20,20], index: 3, kind: input, shape index: {}]   ;;  %s11917_s4 = inlined_call_operand.vmem [shape: f32[1,20], index: 4, kind: input, shape index: {}]   ;;  %s11918_s5 = inlined_call_operand.hbm [shape: f32[20,36], index: 5, kind: input, shape index: {}]   ;;  %s11919_s6 = inlined_call_operand.vmem [shape: f32[1,36], index: 6, kind: input, shape index: {}]   ;;  %s11920_s7 = inlined_call_operand.vmem [shape: f32[8,36], index: 7, kind: input, shape index: {}]   ;;  %s11921_s8 = inlined_call_operand.vmem [shape: f32[8,36], index: 8, kind: input, shape index: {}]   ;;  %s11922_s9 = inlined_call_operand.hbm [shape: f32[2,8,8], index: 9, kind: output, shape index: {}]  }
   0x1   :  { %11929 = sst [smem:[#allocation17_spill]] %s11922_s9 }
   0x2   :  { %14 = vsyncpa [#allocation3], 0 }
   0x3   :  { %16 = vsyncpa [#allocation3 + $0x1], 0 }
   0x4   :  { %17 = vsyncpa [#allocation6], 0 }
   0x5   :  { %18 = vsyncpa [#allocation9], 0 }
   0x6   :  { %19 = vsyncpa [#allocation4], 0 }
   0x7   :  { %21 = vsyncpa [#allocation4 + $0x1], 0  ;;  %s11145_s30 = smov 0   ;;  %s11147_s10 = smov 0  }
   0x8   :  { %s11149_s11 = smov 0   ;;  %s11151_s12 = smov 0  }
   0x9 LB: > { %11930 = sst [smem:[#allocation15_spill]] %s11070_s30  ;;  %s11166_s13 = sadd.s32 4294967295, %s11082_s12   ;;  %s11082_s12 = sphi %s11151_s12, %s11954_s12   ;;  %s11078_s11 = sphi %s11149_s11, %s11953_s11   ;;  %s11074_s10 = sphi %s11147_s10, %s11952_s10   ;;  %s11070_s30 = sphi %s11145_s30, %s11951_s30  }
   0xa   : > { %s9607_s14 = sadd.s32 4294967294, %s11082_s12   ;;  %p47_p0 = scmp.ne.s32.totalorder %s11074_s10, %s11070_s30 }
   0xb   : > { %p11923_p1 = scmp.eq.s32.totalorder %s11166_s13, 0  ;;  %p245_p3 = scmp.eq.s32.totalorder %s9607_s14, 1 }
   0xc   : > { %p9608_p5 = scmp.ge.s32.totalorder %s11082_s12, 1  ;;  %p252_p7 = scmp.lt.s32.totalorder %s11082_s12, 3 }
   0xd   : > { %p11175_p4 = por %p11923_p1, %p47_p0  ;;  %p11180_p6 = por %p245_p3, %p47_p0 }
   0xe   : > { %p11185_p8 = pnand %p9608_p5, %p252_p7  ;;  %s11084_s18 = smov [#allocation5]  }
   0xf   : > { %s11931_s15 = scalar_select %p11175_p4, 1, 0 }
  0x10   : > { %s11932_s16 = scalar_select %p11180_p6, 1, 0 }
  0x11   : > { %s11934_s17 = scalar_select %p11185_p8, 1, 0 }
  0x12   : > { %11933 = sst [smem:[#allocation16_spill]] %s11932_s16  ;;  %s264_s19 = sshll.u32 %s11084_s18, 4  ;;  %s11189_s19 = int_to_ptr.vmem [resolvable:$true] %s264_s19 }
  0x13   : > { %p10823_p9 = pneg %p11185_p8  ;;  %s11085_s21 = smov [#allocation7]  }
  0x14   : > { %s280_s22 = sshll.u32 %s11085_s21, 4  ;;  %s11086_s23 = smov [#allocation8]   ;;  %s11200_s22 = int_to_ptr.vmem [resolvable:$true] %s280_s22 }
  0x15   : > { %p11196_p11 = pnand %p10823_p9, %p11923_p1  ;;  %s11202_s24 = sshll.u32 %s11086_s23, 4  ;;  %s297_s24 = int_to_ptr.vmem [resolvable:$true] %s11202_s24 }
  0x16   : > { %s10894_s27 = scalar_lea.hbm %s11914_s1, 256 }
  0x17   : > { %p10895_p12 = scmp.ne.s32.totalorder %s11914_s1, %s10894_s27  ;;  %p11212_p13 = pneg %p11196_p11 }
  0x18   : > { %p10901_p5 = scmp.lt.u32.totalorder %s10894_s27, %s11914_s1 }
  0x19   : > { %p10897_p0 = pnand %p11212_p13, %p10895_p12 }
  0x1b   : > { %p10898_p3 = pneg %p10897_p0 }
  0x1d   : > { %p10903_p7 = pnand %p10901_p5, %p10898_p3 }
  0x1f   : > { %10906 = shalt.err (!%p10903_p7)
}
  0x20   : > { %s10907_s23 = scalar_lea.vmem %s11189_s19, 256  ;;  %p10915_p2 = scmp.lt.s32.totalorder %s11189_s19, %s11189_s19 }
  0x21   : > { %p10908_p9 = scmp.ne.s32.totalorder %s11189_s19, %s10907_s23  ;;  %p10916_p6 = scmp.lt.s32.totalorder %s10907_s23, %s10907_s23 }
  0x23   : > { %p10910_p10 = pnand %p10908_p9, %p11212_p13  ;;  %p10917_p12 = por %p10916_p6, %p10915_p2 }
  0x25   : > { %p10911_p1 = pneg %p10910_p10 }
  0x27   : > { %p10918_p0 = pnand %p10917_p12, %p10911_p1 }
  0x29   : > { %10921 = shalt.err (!%p10918_p0)
}
  0x2a   : > { %s11087_s25 = smov 128   ;;  %s11088_s26 = smov 8  }
  0x2b   : > { %10826 = dma.hbm_to_vmem [thread:$0]  (!%p11196_p11), %s11914_s1, 256, %s11189_s19, [#allocation6], %s11087_s25, %s11087_s25, %s11088_s26  }
  0x2c   : > { %s10922_s21 = scalar_lea.hbm %s11916_s3, 384 }
  0x2d   : > { %p10923_p1 = scmp.ne.s32.totalorder %s11916_s3, %s10922_s21  ;;  %p10929_p10 = scmp.lt.u32.totalorder %s10922_s21, %s11916_s3 }
  0x2f   : > { %p10925_p2 = pnand %p10923_p1, %p11212_p13 }
  0x31   : > { %p10926_p6 = pneg %p10925_p2 }
  0x33   : > { %p10931_p3 = pnand %p10929_p10, %p10926_p6 }
  0x35   : > { %10934 = shalt.err (!%p10931_p3)
}
  0x36   : > { %s10935_s19 = scalar_lea.vmem %s11200_s22, 384  ;;  %p10943_p12 = scmp.lt.s32.totalorder %s11200_s22, %s11200_s22 }
  0x37   : > { %p10936_p5 = scmp.ne.s32.totalorder %s11200_s22, %s10935_s19  ;;  %p10944_p0 = scmp.lt.s32.totalorder %s10935_s19, %s10935_s19 }
  0x39   : > { %p10938_p7 = pnand %p10936_p5, %p11212_p13  ;;  %p10945_p1 = por %p10944_p0, %p10943_p12 }
  0x3b   : > { %p10939_p9 = pneg %p10938_p7 }
  0x3d   : > { %p10946_p2 = pnand %p10945_p1, %p10939_p9 }
  0x3f   : > { %10949 = shalt.err (!%p10946_p2)
}
  0x40   : > { %10829 = dma.hbm_to_vmem [thread:$0]  (!%p11196_p11), %s11916_s3, 384, %s11200_s22, [#allocation6], %s11087_s25, %s11087_s25, %s11088_s26  }
  0x41   : > { %s10950_s28 = scalar_lea.hbm %s11918_s5, 384 }
  0x42   : > { %p10951_p6 = scmp.ne.s32.totalorder %s11918_s5, %s10950_s28  ;;  %p10957_p5 = scmp.lt.u32.totalorder %s10950_s28, %s11918_s5 }
  0x44   : > { %p10953_p10 = pnand %p10951_p6, %p11212_p13 }
  0x46   : > { %p10954_p3 = pneg %p10953_p10 }
  0x48   : > { %p10959_p7 = pnand %p10957_p5, %p10954_p3 }
  0x4a   : > { %10962 = shalt.err (!%p10959_p7)
}
  0x4b   : > { %s10963_s19 = scalar_lea.vmem %s297_s24, 384  ;;  %p10971_p1 = scmp.lt.s32.totalorder %s297_s24, %s297_s24 }
  0x4c   : > { %p10964_p9 = scmp.ne.s32.totalorder %s297_s24, %s10963_s19  ;;  %p10972_p2 = scmp.lt.s32.totalorder %s10963_s19, %s10963_s19 }
  0x4e   : > { %p10966_p12 = pnand %p10964_p9, %p11212_p13  ;;  %p10973_p4 = por %p10972_p2, %p10971_p1 }
  0x50   : > { %p10967_p0 = pneg %p10966_p12 }
  0x52   : > { %p10974_p8 = pnand %p10973_p4, %p10967_p0 }
  0x54   : > { %10977 = shalt.err (!%p10974_p8)
}
  0x55   : > { %10832 = dma.hbm_to_vmem [thread:$0]  (!%p11196_p11), %s11918_s5, 384, %s297_s24, [#allocation9], %s11087_s25, %s11087_s25, %s11088_s26  }
  0x56   : > { %s11285_s14 = sadd.s32 1, %s11082_s12   ;;  %s34_s30 = sadd.s32 1, %s11078_s11 }
  0x57   : > { %s31_s20 = ssub.s32 %s11082_s12, %s11285_s14  ;;  %p41_p8 = scmp.ne.s32.totalorder %s11078_s11, %s11074_s10 }
  0x58   : > { %p32_p4 = scmp.eq.s32.totalorder %s31_s20, 0  ;;  %p42_p13 = scmp.eq.s32.totalorder %s11082_s12, 0 }
  0x59   : > { %p10844_p6 = scmp.lt.s32.totalorder %s11082_s12, 2  ;;  %p11937_p3 = scmp.eq.s32.totalorder %s11166_s13, 1 }
  0x5a   : > { %s11295_s16 = scalar_select %p32_p4, %s11078_s11, %s34_s30  }
  0x5b   : > { %p43_p10 = por %p42_p13, %p41_p8  ;;  %p11299_p5 = por %p11937_p3, %p41_p8 }
  0x5c   : > { %s319_s28 = sand.u32 1, %s11078_s11   ;;  %s9613_s29 = sshll.u32 %s11082_s12, 4 }
  0x5d   : > { %s11308_s26 = scalar_lea.hbm %s11913_s0, %s9613_s29  ;;  %s322_s18 = scalar_lea.vmem [#allocation2], %s319_s28 }
  0x5e   : > { %s329_s21 = sshll.u32 %s322_s18, 4  ;;  %p11312_p11 = pnand %p10844_p6, %p43_p10  ;;  %s11310_s21 = int_to_ptr.vmem [resolvable:$true] %s329_s21 }
  0x5f   : > { %s320_s19 = scalar_lea.sflag [#allocation3], %s319_s28  ;;  %s10978_s22 = scalar_lea.hbm %s11308_s26, 16 }
  0x60   : > { %p10979_p7 = scmp.ne.s32.totalorder %s11308_s26, %s10978_s22  ;;  %p10980_p9 = pneg %p11312_p11 }
  0x61   : > { %s10983_s30 = scalar_lea.hbm %s11913_s0, 32  ;;  %p10984_p1 = scmp.lt.u32.totalorder %s11308_s26, %s11913_s0 }
  0x62   : > { %p10981_p12 = pnand %p10980_p9, %p10979_p7  ;;  %p10985_p2 = scmp.lt.u32.totalorder %s10983_s30, %s10978_s22 }
  0x63   : > { %p10987_p8 = scmp.lt.u32.totalorder %s10978_s22, %s11308_s26 }
  0x64   : > { %p10982_p0 = pneg %p10981_p12  ;;  %p10986_p4 = por %p10985_p2, %p10984_p1 }
  0x66   : > { %p10988_p13 = por %p10987_p8, %p10986_p4 }
  0x68   : > { %p10989_p6 = pnand %p10988_p13, %p10982_p0 }
  0x6a   : > { %10992 = shalt.err (!%p10989_p6)
}
  0x6b   : > { %s10993_s28 = scalar_lea.vmem %s11310_s21, 16  ;;  %s11089_s25 = smov [#allocation2]  }
  0x6c   : > { %p10994_p10 = scmp.ne.s32.totalorder %s11310_s21, %s10993_s28  ;;  %s10998_s18 = sshll.u32 %s11089_s25, 4  ;;  %s10999_s18 = int_to_ptr.vmem [resolvable:$false] %s10998_s18 }
  0x6d   : > { %s11000_s9 = scalar_lea.vmem %s10999_s18, 32  ;;  %p11001_p12 = scmp.lt.s32.totalorder %s11310_s21, %s10999_s18 }
  0x6e   : > { %p10996_p3 = pnand %p10994_p10, %p10980_p9  ;;  %p11002_p1 = scmp.lt.s32.totalorder %s11000_s9, %s10993_s28 }
  0x70   : > { %p10997_p7 = pneg %p10996_p3  ;;  %p11003_p2 = por %p11002_p1, %p11001_p12 }
  0x72   : > { %p11004_p4 = pnand %p11003_p2, %p10997_p7 }
  0x74   : > { %11007 = shalt.err (!%p11004_p4)
}
  0x75   : > { %10836 = dma.hbm_to_vmem [thread:$0]  (!%p11312_p11), %s11308_s26, 16, %s11310_s21, %s320_s19  }
  0x76   : > { %p11940_p0 = scmp.ne.s32.totalorder %s11934_s17, 0 }
  0x77   : > { %s11344_s22 = sand.u32 (!%p11940_p0), 1, %s11074_s10   ;;  %p11941_p9 = scmp.ne.s32.totalorder (!%p11940_p0), %s11931_s15, 0 }
  0x78   : > { %338 = sbr.rel (%p11940_p0) target bundleno = 5368 (0x14f8), region = 56  ;;  %s341_s20 = scalar_lea.sflag (!%p11940_p0), [#allocation3], %s11344_s22 }
  0x79   : > { %s343_s30 = scalar_lea.vmem (!%p11940_p0), [#allocation2], %s11344_s22 }
  0x7f   : > { %11053 = dma.done.wait (%p11941_p9), %s341_s20, 16  }
  0x80   : > { %11055 = vsyncadd (%p11941_p9), %s341_s20, 4294967280  ;;  %p11942_p8 = scmp.eq.s32.totalorder %s11166_s13, 0 }
  0x82   : > { %11057 = dma.done.wait (%p11942_p8), [#allocation6], 640   ;;  %p11943_p11 = pmov %p11942_p8 }
  0x83   : > { %p11944_p13 = pmov %p11942_p8 }
  0x84   : > { %11059 = vsyncadd (%p11943_p11), [#allocation6], 4294966656 }
  0x85   : > { %11061 = dma.done.wait (%p11944_p13), [#allocation9], 384   ;;  %p11945_p6 = pmov %p11942_p8 }
  0x86   : > { %v11090_v0 = vmov 0.0|0.0   ;;  %vm11091_vm0 = vmmov 0   ;;  %v11092_v1 = vmov 0.0   ;;  %vm397_vm1 = vcmask 1041408   ;;  %v390_v2 = vld [vmem:[#allocation5] sm:$0xff]  ;;  %v863_v26 = vld [vmem:[#allocation7] sm:$0xff] }
  0x87   : > { %11063 = vsyncadd (%p11945_p6), [#allocation9], 4294966912  ;;  %10557 = vmatprep.subr.bf16.mxu0 %v11090_v0  ;;  %9901 = vmatprep.mubr.msk.f32.mxu0 %vm11091_vm0, %v11092_v1  ;;  %vm393_vm2 = vcmask 80896   ;;  %v391_v3 = vld [vmem:[#allocation5 + $0x8] sm:$0x3]  ;;  %v402_v6 = vand.u32 4294901760, %v390_v2 }
  0x88   : > { %10575 = vmatprep.subr.bf16.mxu1 %v11090_v0  ;;  %9945 = vmatprep.mubr.msk.f32.mxu1 %vm11091_vm0, %v11092_v1  ;;  %v389_v4 = vld [vmem:[%s343_s30] sm:$0x1]  ;;  %v399_v5 = vsel %vm397_vm1, %v391_v3, 0  ;;  %v864_v27 = vld [vmem:[#allocation7 + $0x8] sm:$0xff]  ;;  %v876_v28 = vand.u32 4294901760, %v863_v26  ;;  %vm871_vm3 = vcmask 1043456  }
  0x89   : > { %v395_v7 = vsel %vm393_vm2, %v389_v4, 0  ;;  %v405_v8 = vand.u32 4294901760, %v399_v5  ;;  %v480_v10 = vsub.f32 %v390_v2, %v402_v6  ;;  %v879_v29 = vand.u32 4294901760, %v864_v27  ;;  %v865_v30 = vld [vmem:[#allocation7 + $0x10] sm:$0xf]  ;;  %v1350_v61 = vld [vmem:[#allocation8] sm:$0xff] }
  0x8a   : > { %v468_v9 = vand.u32 4294901760, %v395_v7  ;;  %v955_v32 = vsub.f32 %v863_v26, %v876_v28  ;;  %v873_v34 = vsel %vm871_vm3, %v865_v30, 0  ;;  %v392_v45 = vld [vmem:[%s11915_s2] sm:$0x1]  ;;  %vm867_vm5 = vcmask 162816   ;;  %v1351_v62 = vld [vmem:[#allocation8 + $0x8] sm:$0xff] }
  0x8b   : > { %v10558_v11 = vpack.c.bf16 %v405_v8, %v402_v6  ;;  %v487_v12 = vsub.f32 %v399_v5, %v405_v8  ;;  %v481_v14 = vand.u32 4294901760, %v480_v10  ;;  %v10576_v31 = vpack.c.bf16 %v879_v29, %v876_v28  ;;  %v1352_v6 = vld [vmem:[#allocation8 + $0x10] sm:$0xf]  ;;  %s9618_s9 = sshll.u32 %s11344_s22, 3  ;;  %s9624_s20 = sshll.u32 %s11166_s13, 7 }
  0x8c   : > { %v469_v13 = vsub.f32 %v395_v7, %v468_v9  ;;  %v962_v33 = vsub.f32 %v864_v27, %v879_v29  ;;  %v882_v35 = vand.u32 4294901760, %v873_v34  ;;  %v956_v36 = vand.u32 4294901760, %v955_v32  ;;  %s388_s30 = scalar_lea.vmem [#allocation10], %s9618_s9  ;;  %s11946_s21 = sld [smem:[#allocation17_spill]] }
  0x8d   : > { %10559 = vmatpush3.bf16.msra.mxu0 %v10558_v11  ;;  %v488_v16 = vand.u32 4294901760, %v487_v12  ;;  %v482_v17 = vsub.f32 %v480_v10, %v481_v14  ;;  %v10564_v24 = vpack.c.bf16 %v487_v12, %v480_v10  ;;  %10577 = vmatpush3.bf16.msra.mxu1 %v10576_v31  ;;  %v1361_v63 = vand.u32 4294901760, %v1350_v61  ;;  %s9511_s15 = sshll.u32 %s388_s30, 4  ;;  %s9498_s19 = scalar_lea.sflag [#allocation4], %s11344_s22  ;;  %s11870_s15 = int_to_ptr.vmem [resolvable:$true] %s9511_s15 }
  0x8e   : > { %v470_v15 = vand.u32 4294901760, %v469_v13  ;;  %10560 = vmatprep.subr.bf16.mxu0 %v11090_v0  ;;  %v963_v37 = vand.u32 4294901760, %v962_v33  ;;  %9943 = vmatprep.subr.mxu1 %v11092_v1  ;;  %v957_v38 = vsub.f32 %v955_v32, %v956_v36  ;;  %v10582_v43 = vpack.c.bf16 %v962_v33, %v955_v32  ;;  %s11008_s29 = scalar_lea.vmem %s11870_s15, 128  ;;  %s11094_s13 = smov [#allocation10]  }
  0x8f   : > { %v489_v19 = vsub.f32 %v487_v12, %v488_v16  ;;  %v483_v20 = vand.u32 4294901760, %v482_v17  ;;  %v10570_v25 = vpack.c.bf16 %v488_v16, %v481_v14  ;;  %v969_v52 = vsub.f32 %v873_v34, %v882_v35  ;;  %p11009_p10 = scmp.ne.s32.totalorder %s11870_s15, %s11008_s29  ;;  %s11012_s24 = sshll.u32 %s11094_s13, 4  ;;  %s11013_s24 = int_to_ptr.vmem [resolvable:$false] %s11012_s24 }
  0x90   : > { %v471_v18 = vsub.f32 %v469_v13, %v470_v15  ;;  %v964_v39 = vsub.f32 %v962_v33, %v963_v37  ;;  %v958_v40 = vand.u32 4294901760, %v957_v38  ;;  %v10588_v44 = vpack.c.bf16 %v963_v37, %v956_v36  ;;  %v1353_v38 = vld [vmem:[%s11919_s6] sm:$0x1]  ;;  %s11014_s28 = scalar_lea.vmem %s11013_s24, 256  ;;  %p11015_p12 = scmp.lt.s32.totalorder %s11870_s15, %s11013_s24 }
  0x91   : > { %v490_v22 = vand.u32 4294901760, %v489_v19  ;;  %9944 = vmatpush3.msra.mxu1 %v882_v35  ;;  %v970_v55 = vand.u32 4294901760, %v969_v52  ;;  %v1364_v2 = vand.u32 4294901760, %v1351_v62  ;;  %v1440_v3 = vsub.f32 %v1350_v61, %v1361_v63  ;;  %v866_v19 = vld [vmem:[%s11917_s4] sm:$0x1]  ;;  %p11010_p3 = pnand %p11009_p10, %p11299_p5  ;;  %p11016_p1 = scmp.lt.s32.totalorder %s11014_s28, %s11008_s29 }
  0x92   : > { %v472_v21 = vand.u32 4294901760, %v471_v18  ;;  %v965_v41 = vand.u32 4294901760, %v964_v39  ;;  %10578 = vmatprep.subr.bf16.mxu1 %v11090_v0  ;;  %v1358_v7 = vsel %vm871_vm3, %v1352_v6, 0  ;;  %vm1841_vm7 = vcmask 293888   ;;  %s11868_s23 = scalar_lea.hbm %s11946_s21, %s9624_s20 }
  0x93   : > { %v10561_v23 = vpack.c.bf16 %v490_v22, %v483_v20  ;;  %v971_v58 = vsub.f32 %v969_v52, %v970_v55  ;;  %v1447_v4 = vsub.f32 %v1351_v62, %v1364_v2  ;;  %v1367_v8 = vand.u32 4294901760, %v1358_v7  ;;  %p11011_p7 = pneg %p11010_p3  ;;  %p11017_p2 = por %p11016_p1, %p11015_p12 }
  0x94   : > { %9902 = vmatmul.mubr.f32.vlgmr.msra.gmra.mrb[0].mxu0 %v472_v21  ;;  %v10579_v42 = vpack.c.bf16 %v965_v41, %v958_v40  ;;  %v10594_v10 = vpack.c.bf16 %v1364_v2, %v1361_v63  ;;  %vm2754_vm9 = vcmask 64512  }
  0x95   : > { %9908 = vmatprep.mubr.msk.f32.mxu0 %vm11091_vm0, %v11092_v1  ;;  %10562 = vmatpush3.bf16.msra.mxu0 %v10561_v23  ;;  %v972_v60 = vand.u32 4294901760, %v971_v58  ;;  %v10600_v5 = vpack.c.bf16 %v1447_v4, %v1440_v3  ;;  %v1448_v12 = vand.u32 4294901760, %v1447_v4  ;;  %p11018_p4 = pnand %p11017_p2, %p11011_p7 }
  0x96   : > { %10563 = vmatprep.subr.bf16.mxu0 %v11090_v0 }
  0x97   : > { %v1449_v14 = vsub.f32 %v1447_v4, %v1448_v12 }
  0x99   : > { %v1450_v16 = vand.u32 4294901760, %v1449_v14 }
  0x9c   : > { %9909 = vmatmul.mubr.f32.vlgmr.msra.gmra.mrb[0].mxu0 %v468_v9 }
  0x9d   : > { %10565 = vmatpush3.bf16.msra.mxu0 %v10564_v24  ;;  %9915 = vmatprep.mubr.msk.f32.mxu0 %vm11091_vm0, %v11092_v1 }
  0x9e   : > { %10566 = vmatprep.subr.bf16.mxu0 %v11090_v0 }
  0xa4   : > { %9916 = vmatmul.mubr.f32.vlgmr.msra.gmra.mrb[0].mxu0 %v469_v13 }
  0xa5   : > { %10568 = vmatpush3.bf16.msra.mxu0 %v10558_v11  ;;  %9922 = vmatprep.mubr.msk.f32.mxu0 %vm11091_vm0, %v11092_v1 }
  0xa6   : > { %10569 = vmatprep.subr.bf16.mxu0 %v11090_v0 }
  0xac   : > { %9923 = vmatmul.mubr.f32.vlgmr.msra.gmra.mrb[0].mxu0 %v470_v15 }
  0xad   : > { %10571 = vmatpush3.bf16.msra.mxu0 %v10570_v25  ;;  %9929 = vmatprep.mubr.msk.f32.mxu0 %vm11091_vm0, %v11092_v1 }
  0xae   : > { %10572 = vmatprep.subr.bf16.mxu0 %v11090_v0 }
  0xb4   : > { %9930 = vmatmul.mubr.f32.vlgmr.msra.gmra.mrb[0].mxu0 %v468_v9 }
  0xb5   : > { %10574 = vmatpush3.bf16.msra.mxu0 %v10558_v11  ;;  %9936 = vmatprep.mubr.msk.f32.mxu0 %vm11091_vm0, %v11092_v1  ;;  %v1441_v11 = vand.u32 4294901760, %v1440_v3 }
  0xb6   : > { %10599 = vmatprep.subr.bf16.mxu0 %v11090_v0 }
  0xb7   : > { %v1442_v13 = vsub.f32 %v1440_v3, %v1441_v11  ;;  %v10606_v18 = vpack.c.bf16 %v1448_v12, %v1441_v11  ;;  %v11093_v12 = vmov 1.0  }
  0xb9   : > { %v1443_v15 = vand.u32 4294901760, %v1442_v13 }
  0xbb   : > { %v10597_v17 = vpack.c.bf16 %v1450_v16, %v1443_v15 }
  0xbc   : > { %9937 = vmatmul.mubr.f32.vlgmr.msra.gmra.mrb[0].mxu0 %v468_v9  ;;  %v1454_v9 = vsub.f32 %v1358_v7, %v1367_v8 }
  0xbd   : > { %10017 = vmatprep.mubr.msk.f32.mxu0 %vm11091_vm0, %v11092_v1  ;;  %10601 = vmatpush3.bf16.msra.mxu0 %v10600_v5 }
  0xbe   : > { %10015 = vmatprep.subr.mxu0 %v11092_v1  ;;  %v1455_v28 = vand.u32 4294901760, %v1454_v9 }
  0xc1   : > { %10016 = vmatpush3.msra.mxu0 %v1454_v9 }
  0xc2   : > { %10602 = vmatprep.subr.bf16.mxu0 %v11090_v0 }
 0x18f   : > { %v856_v46 = vpop.f32.mrb[0].mxu0 }
 0x190   : > { %v10611_v47 = vadd.f32 %v856_v46, %v392_v45  ;;  %v9938_v48 = vpop.f32.mrb[1].mxu0 }
 0x192   : > { %vm860_vm4 = vcmp.gt.f32.partialorder %v10611_v47, 0.0  ;;  %v861_v49 = vmul.f32 0.01, %v10611_v47 }
 0x194   : > { %v862_v50 = vsel %vm860_vm4, %v10611_v47, %v861_v49  ;;  %v1839_v47 = vld [vmem:[%s11921_s8] sm:$0xff] }
 0x195   : > { %v869_v51 = vsel %vm867_vm5, %v862_v50, 0  ;;  %v2298_v61 = vsel %vm1841_vm7, %v1839_v47, 0 }
 0x196   : > { %v943_v53 = vand.u32 4294901760, %v869_v51  ;;  %v2301_v63 = vand.u32 4294901760, %v2298_v61 }
 0x198   : > { %v944_v54 = vsub.f32 %v869_v51, %v943_v53  ;;  %v2378_v3 = vsub.f32 %v2298_v61, %v2301_v63 }
 0x19a   : > { %v945_v56 = vand.u32 4294901760, %v944_v54  ;;  %v2379_v5 = vand.u32 4294901760, %v2378_v3 }
 0x19c   : > { %v946_v57 = vsub.f32 %v944_v54, %v945_v56  ;;  %v2380_v7 = vsub.f32 %v2378_v3, %v2379_v5 }
 0x19e   : > { %v947_v59 = vand.u32 4294901760, %v946_v57 }
 0x1a0   : > { %9946 = vmatmul.mubr.f32.vlgmr.msra.gmra.mrb[0].mxu1 %v947_v59 }
 0x1a1   : > { %10580 = vmatpush3.bf16.msra.mxu1 %v10579_v42  ;;  %9954 = vmatprep.mubr.msk.f32.mxu1 %vm11091_vm0, %v11092_v1 }
 0x1a2   : > { %9952 = vmatprep.subr.mxu1 %v11092_v1 }
 0x1a5   : > { %9953 = vmatpush3.msra.mxu1 %v972_v60 }
 0x1a6   : > { %10581 = vmatprep.subr.bf16.mxu1 %v11090_v0 }
 0x1a8   : > { %9955 = vmatmul.mubr.f32.vlgmr.msra.gmra.mrb[0].mxu1 %v943_v53 }
 0x1a9   : > { %10583 = vmatpush3.bf16.msra.mxu1 %v10582_v43  ;;  %9963 = vmatprep.mubr.msk.f32.mxu1 %vm11091_vm0, %v11092_v1  ;;  %v1834_v43 = vlaneseq }
 0x1aa   : > { %9961 = vmatprep.subr.mxu1 %v11092_v1 }
 0x1ab   : > { %v2749_v11 = vand.u32 127, %v1834_v43 }
 0x1ad   : > { %9962 = vmatpush3.msra.mxu1 %v969_v52 }
 0x1ae   : > { %10584 = vmatprep.subr.bf16.mxu1 %v11090_v0 }
 0x1b0   : > { %9964 = vmatmul.mubr.f32.vlgmr.msra.gmra.mrb[0].mxu1 %v944_v54 }
 0x1b1   : > { %10586 = vmatpush3.bf16.msra.mxu1 %v10576_v31  ;;  %9972 = vmatprep.mubr.msk.f32.mxu1 %vm11091_vm0, %v11092_v1 }
 0x1b2   : > { %9970 = vmatprep.subr.mxu1 %v11092_v1 }
 0x1b5   : > { %9971 = vmatpush3.msra.mxu1 %v882_v35 }
 0x1b6   : > { %10587 = vmatprep.subr.bf16.mxu1 %v11090_v0 }
 0x1b8   : > { %9973 = vmatmul.mubr.f32.vlgmr.msra.gmra.mrb[0].mxu1 %v945_v56 }
 0x1b9   : > { %10589 = vmatpush3.bf16.msra.mxu1 %v10588_v44  ;;  %9981 = vmatprep.mubr.msk.f32.mxu1 %vm11091_vm0, %v11092_v1  ;;  %v11451_v44 = vshrl.u32 %v1834_v43, 7 }
 0x1ba   : > { %9979 = vmatprep.subr.mxu1 %v11092_v1 }
 0x1bb   : > { %v1836_v45 = vsub.s32 0, %v11451_v44  ;;  %vm2750_vm8 = vcmp.eq.s32.totalorder %v11451_v44, %v2749_v11 }
 0x1bc   : > { %v11503_v13 = vsel %vm2750_vm8, 1.0, %v11092_v1 }
 0x1bd   : > { %9980 = vmatpush3.msra.mxu1 %v970_v55  ;;  %v2836_v14 = vsub.f32 %v11503_v13, %v11503_v13 }
 0x1be   : > { %10590 = vmatprep.subr.bf16.mxu1 %v11090_v0 }
 0x1c0   : > { %9982 = vmatmul.mubr.f32.vlgmr.msra.gmra.mrb[0].mxu1 %v943_v53 }
 0x1c1   : > { %10592 = vmatpush3.bf16.msra.mxu1 %v10576_v31  ;;  %9990 = vmatprep.mubr.msk.f32.mxu1 %vm11091_vm0, %v11092_v1  ;;  %v1456_v31 = vsub.f32 %v1454_v9, %v1455_v28  ;;  %v2381_v9 = vand.u32 4294901760, %v2380_v7 }
 0x1c2   : > { %9988 = vmatprep.subr.mxu1 %v11092_v1 }
 0x1c3   : > { %v1457_v33 = vand.u32 4294901760, %v1456_v31 }
 0x1c5   : > { %9989 = vmatpush3.msra.mxu1 %v882_v35 }
 0x1c6   : > { %10593 = vmatprep.subr.bf16.mxu1 %v11090_v0 }
 0x1c8   : > { %9991 = vmatmul.mubr.f32.vlgmr.msra.gmra.mrb[0].mxu1 %v943_v53 }
 0x1c9   : > { %9999 = vmatprep.mubr.msk.f32.mxu1 %vm11091_vm0, %v11092_v1  ;;  %10595 = vmatpush3.bf16.msra.mxu1 %v10594_v10 }
 0x1ca   : > { %9997 = vmatprep.subr.mxu1 %v11092_v1 }
 0x1cd   : > { %9998 = vmatpush3.msra.mxu1 %v1367_v8 }
 0x1ce   : > { %10596 = vmatprep.subr.bf16.mxu1 %v11090_v0 }
 0x29b   : > { %v1343_v20 = vpop.f32.mrb[0].mxu1 }
 0x29c   : > { %v10612_v21 = vadd.f32 %v1343_v20, %v866_v19  ;;  %v9992_v22 = vpop.f32.mrb[1].mxu1  ;;  %v2837_v19 = vand.u32 4294901760, %v2836_v14 }
 0x29e   : > { %vm1347_vm6 = vcmp.gt.f32.partialorder %v10612_v21, 0.0  ;;  %v1348_v23 = vmul.f32 0.01, %v10612_v21  ;;  %v2838_v22 = vsub.f32 %v2836_v14, %v2837_v19 }
 0x2a0   : > { %v1349_v24 = vsel %vm1347_vm6, %v10612_v21, %v1348_v23 }
 0x2a1   : > { %v1355_v25 = vsel %vm867_vm5, %v1349_v24, 0 }
 0x2a2   : > { %v1428_v26 = vand.u32 4294901760, %v1355_v25 }
 0x2a4   : > { %v1429_v27 = vsub.f32 %v1355_v25, %v1428_v26  ;;  %v2839_v25 = vand.u32 4294901760, %v2838_v22 }
 0x2a6   : > { %10018 = vmatmul.mubr.f32.vlgmr.msra.gmra.mrb[2].mxu0 %v1429_v27  ;;  %v1430_v29 = vand.u32 4294901760, %v1429_v27 }
 0x2a7   : > { %10604 = vmatpush3.bf16.msra.mxu0 %v10594_v10  ;;  %10026 = vmatprep.mubr.msk.f32.mxu0 %vm11091_vm0, %v11092_v1 }
 0x2a8   : > { %v1431_v30 = vsub.f32 %v1429_v27, %v1430_v29  ;;  %10024 = vmatprep.subr.mxu0 %v11092_v1 }
 0x2aa   : > { %v1432_v32 = vand.u32 4294901760, %v1431_v30 }
 0x2ab   : > { %10025 = vmatpush3.msra.mxu0 %v1367_v8 }
 0x2ac   : > { %10000 = vmatmul.mubr.f32.vlgmr.msra.gmra.mrb[2].mxu1 %v1432_v32  ;;  %10605 = vmatprep.subr.bf16.mxu0 %v11090_v0 }
 0x2ad   : > { %10598 = vmatpush3.bf16.msra.mxu1 %v10597_v17  ;;  %10008 = vmatprep.mubr.msk.f32.mxu1 %vm11091_vm0, %v11092_v1 }
 0x2ae   : > { %10027 = vmatmul.mubr.f32.vlgmr.msra.gmra.mrb[2].mxu0 %v1430_v29  ;;  %10006 = vmatprep.subr.mxu1 %v11092_v1 }
 0x2af   : > { %10607 = vmatpush3.bf16.msra.mxu0 %v10606_v18  ;;  %10035 = vmatprep.mubr.msk.f32.mxu0 %vm11091_vm0, %v11092_v1 }
 0x2b0   : > { %10033 = vmatprep.subr.mxu0 %v11092_v1 }
 0x2b1   : > { %10007 = vmatpush3.msra.mxu1 %v1457_v33 }
 0x2b2   : > { %10047 = vmatprep.subr.mxu1 %v11092_v1 }
 0x2b3   : > { %10034 = vmatpush3.msra.mxu0 %v1455_v28 }
 0x2b4   : > { %10009 = vmatmul.mubr.f32.vlgmr.msra.gmra.mrb[2].mxu1 %v1428_v26  ;;  %10608 = vmatprep.subr.bf16.mxu0 %v11090_v0  ;;  %v1833_v0 = vld [vmem:[%s11920_s7] sm:$0xff] }
 0x2b5   : > { %10049 = vmatprep.mubr.msk.f32.mxu1 %vm11091_vm0, %v11092_v1  ;;  %v1846_v34 = vsel %vm1841_vm7, %v1833_v0, 0 }
 0x2b6   : > { %10036 = vmatmul.mubr.f32.vlgmr.msra.gmra.mrb[2].mxu0 %v1428_v26  ;;  %v1849_v35 = vand.u32 4294901760, %v1846_v34 }
 0x2b7   : > { %10610 = vmatpush3.bf16.msra.mxu0 %v10594_v10  ;;  %10044 = vmatprep.mubr.msk.f32.mxu0 %vm11091_vm0, %v11092_v1 }
 0x2b8   : > { %10042 = vmatprep.subr.mxu0 %v11092_v1  ;;  %10048 = vmatpush3.xpose.msra.mxu1 %v1849_v35  ;;  %v1926_v49 = vsub.f32 %v1846_v34, %v1849_v35 }
 0x2b9   : > { %10052 = vmatprep.subr.mxu1 %v11092_v1 }
 0x2ba   : > { %v1927_v52 = vand.u32 4294901760, %v1926_v49 }
 0x2bb   : > { %10043 = vmatpush3.msra.mxu0 %v1367_v8 }
 0x2bc   : > { %10107 = vmatprep.subr.mxu0 %v11092_v1  ;;  %v1928_v55 = vsub.f32 %v1926_v49, %v1927_v52 }
 0x2be   : > { %10045 = vmatmul.mubr.f32.vlgmr.msra.gmra.mrb[2].mxu0 %v1428_v26  ;;  %v1929_v58 = vand.u32 4294901760, %v1928_v55 }
 0x2bf   : > { %10109 = vmatprep.mubr.msk.f32.mxu0 %vm11091_vm0, %v11092_v1  ;;  %10108 = vmatpush3.msk.msra.mxu0 %vm2750_vm8, %v11093_v12 }
 0x2c0   : > { %10112 = vmatprep.subr.mxu0 %v11092_v1 }
 0x387   : > { %v1520_v36 = vpop.f32.mrb[2].mxu1 }
 0x388   : > { %v10010_v37 = vpop.f32.mrb[3].mxu1  ;;  %v10613_v39 = vadd.f32 %v1520_v36, %v1353_v38 }
 0x391   : > { %v1828_v40 = vpop.f32.mrb[2].mxu0 }
 0x392   : > { %v10614_v41 = vadd.f32 %v10613_v39, %v1828_v40  ;;  %v10046_v42 = vpop.f32.mrb[3].mxu0 }
 0x394   : > { %10890 = vtanh.f32 %v10614_v41 }
 0x39e   : > { %v10891_v46 = vpop.eup %10890 }
 0x39f   : > { %v1837_v48 = vrot.slane %v10891_v46, %v1836_v45 }
 0x3a1   : > { %v1840_v50 = vmul.f32 %v1839_v47, %v1837_v48  ;;  %v1838_v60 = vmul.f32 %v1837_v48, %v1833_v0 }
 0x3a3   : > { %v1843_v51 = vsel %vm1841_vm7, %v1840_v50, 0  ;;  %v2295_v62 = vsel %vm1841_vm7, %v1838_v60, 0 }
 0x3a4   : > { %v1914_v53 = vand.u32 4294901760, %v1843_v51  ;;  %v2366_v2 = vand.u32 4294901760, %v2295_v62 }
 0x3a6   : > { %v1915_v54 = vsub.f32 %v1843_v51, %v1914_v53  ;;  %v2367_v4 = vsub.f32 %v2295_v62, %v2366_v2 }
 0x3a8   : > { %v1916_v56 = vand.u32 4294901760, %v1915_v54  ;;  %v2368_v6 = vand.u32 4294901760, %v2367_v4 }
 0x3aa   : > { %v1917_v57 = vsub.f32 %v1915_v54, %v1916_v56  ;;  %v2369_v8 = vsub.f32 %v2367_v4, %v2368_v6 }
 0x3ac   : > { %v1918_v59 = vand.u32 4294901760, %v1917_v57  ;;  %v2370_v10 = vand.u32 4294901760, %v2369_v8 }
 0x3ae   : > { %10050 = vmatmul.mubr.f32.vlgmr.msra.gmra.mrb[4].mxu1 %v1918_v59 }
 0x3af   : > { %10053 = vmatpush3.xpose.msra.mxu1 %v1929_v58  ;;  %10054 = vmatprep.mubr.msk.f32.mxu1 %vm11091_vm0, %v11092_v1 }
 0x3b0   : > { %10057 = vmatprep.subr.mxu1 %v11092_v1 }
 0x3b6   : > { %10055 = vmatmul.mubr.f32.vlgmr.msra.gmra.mrb[4].mxu1 %v1914_v53 }
 0x3b7   : > { %10058 = vmatpush3.xpose.msra.mxu1 %v1926_v49  ;;  %10059 = vmatprep.mubr.msk.f32.mxu1 %vm11091_vm0, %v11092_v1 }
 0x3b8   : > { %10062 = vmatprep.subr.mxu1 %v11092_v1 }
 0x3be   : > { %10060 = vmatmul.mubr.f32.vlgmr.msra.gmra.mrb[4].mxu1 %v1915_v54 }
 0x3bf   : > { %10063 = vmatpush3.xpose.msra.mxu1 %v1849_v35  ;;  %10064 = vmatprep.mubr.msk.f32.mxu1 %vm11091_vm0, %v11092_v1 }
 0x3c0   : > { %10067 = vmatprep.subr.mxu1 %v11092_v1 }
 0x3c6   : > { %10065 = vmatmul.mubr.f32.vlgmr.msra.gmra.mrb[4].mxu1 %v1916_v56 }
 0x3c7   : > { %10068 = vmatpush3.xpose.msra.mxu1 %v1927_v52  ;;  %10069 = vmatprep.mubr.msk.f32.mxu1 %vm11091_vm0, %v11092_v1 }
 0x3c8   : > { %10072 = vmatprep.subr.mxu1 %v11092_v1 }
 0x3ce   : > { %10070 = vmatmul.mubr.f32.vlgmr.msra.gmra.mrb[4].mxu1 %v1914_v53 }
 0x3cf   : > { %10073 = vmatpush3.xpose.msra.mxu1 %v1849_v35  ;;  %10074 = vmatprep.mubr.msk.f32.mxu1 %vm11091_vm0, %v11092_v1 }
 0x3d0   : > { %10077 = vmatprep.subr.mxu1 %v11092_v1 }
 0x3d6   : > { %10075 = vmatmul.mubr.f32.vlgmr.msra.gmra.mrb[4].mxu1 %v1914_v53 }
 0x3d7   : > { %10078 = vmatpush3.xpose.msra.mxu1 %v2301_v63  ;;  %10079 = vmatprep.mubr.msk.f32.mxu1 %vm11091_vm0, %v11092_v1 }
 0x3d8   : > { %10082 = vmatprep.subr.mxu1 %v11092_v1 }
 0x3de   : > { %10080 = vmatmul.mubr.f32.vlgmr.msra.gmra.mrb[4].mxu1 %v2370_v10 }
 0x3df   : > { %10083 = vmatpush3.xpose.msra.mxu1 %v2381_v9  ;;  %10084 = vmatprep.mubr.msk.f32.mxu1 %vm11091_vm0, %v11092_v1 }
 0x3e0   : > { %10087 = vmatprep.subr.mxu1 %v11092_v1 }
 0x3e6   : > { %10085 = vmatmul.mubr.f32.vlgmr.msra.gmra.mrb[4].mxu1 %v2366_v2 }
 0x3e7   : > { %10088 = vmatpush3.xpose.msra.mxu1 %v2378_v3  ;;  %10089 = vmatprep.mubr.msk.f32.mxu1 %vm11091_vm0, %v11092_v1 }
 0x3e8   : > { %10092 = vmatprep.subr.mxu1 %v11092_v1 }
 0x3ee   : > { %10090 = vmatmul.mubr.f32.vlgmr.msra.gmra.mrb[4].mxu1 %v2367_v4 }
 0x3ef   : > { %10093 = vmatpush3.xpose.msra.mxu1 %v2301_v63  ;;  %10094 = vmatprep.mubr.msk.f32.mxu1 %vm11091_vm0, %v11092_v1 }
 0x3f0   : > { %10097 = vmatprep.subr.mxu1 %v11092_v1 }
 0x3f6   : > { %10095 = vmatmul.mubr.f32.vlgmr.msra.gmra.mrb[4].mxu1 %v2368_v6 }
 0x3f7   : > { %10098 = vmatpush3.xpose.msra.mxu1 %v2379_v5  ;;  %10099 = vmatprep.mubr.msk.f32.mxu1 %vm11091_vm0, %v11092_v1 }
 0x3f8   : > { %10102 = vmatprep.subr.mxu1 %v11092_v1 }
 0x3fe   : > { %10100 = vmatmul.mubr.f32.vlgmr.msra.gmra.mrb[4].mxu1 %v2366_v2 }
 0x3ff   : > { %10103 = vmatpush3.xpose.msra.mxu1 %v2301_v63  ;;  %10104 = vmatprep.mubr.msk.f32.mxu1 %vm11091_vm0, %v11092_v1 }
 0x400   : > { %10167 = vmatprep.subr.mxu1 %v11092_v1 }
 0x406   : > { %10105 = vmatmul.mubr.f32.vlgmr.msra.gmra.mrb[4].mxu1 %v2366_v2 }
 0x407   : > { %10169 = vmatprep.mubr.msk.f32.mxu1 %vm11091_vm0, %v11092_v1 }
 0x4d9   : > { %v2742_v15 = vpop.f32.mrb[4].mxu1 }
 0x4da   : > { %v2753_v16 = vmul.f32 0.03125, %v2742_v15  ;;  %v10106_v17 = vpop.f32.mrb[5].mxu1 }
 0x4dc   : > { %v2756_v18 = vsel %vm2754_vm9, %v2753_v16, 0 }
 0x4dd   : > { %v11508_v20 = vand.u32 4294901760, %v2756_v18 }
 0x4df   : > { %v11511_v21 = vsub.f32 %v2756_v18, %v11508_v20 }
 0x4e1   : > { %v11514_v23 = vand.u32 4294901760, %v11511_v21 }
 0x4e3   : > { %v2827_v24 = vsub.f32 %v11511_v21, %v11514_v23 }
 0x4e5   : > { %v11518_v26 = vand.u32 4294901760, %v2827_v24 }
 0x4e7   : > { %10110 = vmatmul.mubr.f32.vlgmr.msra.gmra.mrb[4].mxu0 %v11518_v26 }
 0x4e8   : > { %10113 = vmatpush3.msra.mxu0 %v2839_v25  ;;  %10114 = vmatprep.mubr.msk.f32.mxu0 %vm11091_vm0, %v11092_v1 }
 0x4e9   : > { %10117 = vmatprep.subr.mxu0 %v11092_v1 }
 0x4ef   : > { %10115 = vmatmul.mubr.f32.vlgmr.msra.gmra.mrb[4].mxu0 %v11508_v20 }
 0x4f0   : > { %10118 = vmatpush3.msra.mxu0 %v2836_v14  ;;  %10119 = vmatprep.mubr.msk.f32.mxu0 %vm11091_vm0, %v11092_v1 }
 0x4f1   : > { %10122 = vmatprep.subr.mxu0 %v11092_v1 }
 0x4f7   : > { %10120 = vmatmul.mubr.f32.vlgmr.msra.gmra.mrb[4].mxu0 %v11511_v21 }
 0x4f8   : > { %10123 = vmatpush3.msk.msra.mxu0 %vm2750_vm8, %v11093_v12  ;;  %10124 = vmatprep.mubr.msk.f32.mxu0 %vm11091_vm0, %v11092_v1 }
 0x4f9   : > { %10127 = vmatprep.subr.mxu0 %v11092_v1 }
 0x4ff   : > { %10125 = vmatmul.mubr.f32.vlgmr.msra.gmra.mrb[4].mxu0 %v11514_v23 }
 0x500   : > { %10128 = vmatpush3.msra.mxu0 %v2837_v19  ;;  %10129 = vmatprep.mubr.msk.f32.mxu0 %vm11091_vm0, %v11092_v1 }
 0x501   : > { %10132 = vmatprep.subr.mxu0 %v11092_v1 }
 0x507   : > { %10130 = vmatmul.mubr.f32.vlgmr.msra.gmra.mrb[4].mxu0 %v11508_v20 }
 0x508   : > { %10133 = vmatpush3.msk.msra.mxu0 %vm2750_vm8, %v11093_v12  ;;  %10134 = vmatprep.mubr.msk.f32.mxu0 %vm11091_vm0, %v11092_v1 }
 0x509   : > { %10137 = vmatprep.subr.mxu0 %v11092_v1 }
 0x50f   : > { %10135 = vmatmul.mubr.f32.vlgmr.msra.gmra.mrb[4].mxu0 %v11508_v20 }
 0x510   : > { %10139 = vmatprep.mubr.msk.f32.mxu0 %vm11091_vm0, %v11092_v1 }
 0x5e2   : > { %v3200_v27 = vpop.f32.mrb[4].mxu0 }
 0x5e3   : > { %v3204_v28 = vmul.f32 0.1, %v3200_v27  ;;  %v10136_v29 = vpop.f32.mrb[5].mxu0 }
 0x5e5   : > { %v3205_v30 = vadd.f32 %v11503_v13, %v3204_v28 }
 0x5e7   : > { %v3207_v31 = vand.u32 4294901760, %v3205_v30 }
 0x5e9   : > { %v3284_v32 = vsub.f32 %v3205_v30, %v3207_v31  ;;  %10138 = vmatpush3.msra.mxu0 %v3207_v31 }
 0x5ea   : > { %10140 = vmatmul.mubr.f32.vlgmr.msra.gmra.mrb[6].mxu0 %v11518_v26  ;;  %10142 = vmatprep.subr.mxu0 %v11092_v1 }
 0x5eb   : > { %v3285_v33 = vand.u32 4294901760, %v3284_v32  ;;  %10144 = vmatprep.mubr.msk.f32.mxu0 %vm11091_vm0, %v11092_v1 }
 0x5ed   : > { %v3286_v0 = vsub.f32 %v3284_v32, %v3285_v33 }
 0x5ef   : > { %v3287_v34 = vand.u32 4294901760, %v3286_v0 }
 0x5f1   : > { %10143 = vmatpush3.msra.mxu0 %v3287_v34 }
 0x5f2   : > { %10145 = vmatmul.mubr.f32.vlgmr.msra.gmra.mrb[6].mxu0 %v11508_v20  ;;  %10147 = vmatprep.subr.mxu0 %v11092_v1 }
 0x5f3   : > { %10148 = vmatpush3.msra.mxu0 %v3284_v32  ;;  %10149 = vmatprep.mubr.msk.f32.mxu0 %vm11091_vm0, %v11092_v1 }
 0x5f4   : > { %10152 = vmatprep.subr.mxu0 %v11092_v1 }
 0x5fa   : > { %10150 = vmatmul.mubr.f32.vlgmr.msra.gmra.mrb[6].mxu0 %v11511_v21 }
 0x5fb   : > { %10153 = vmatpush3.msra.mxu0 %v3207_v31  ;;  %10154 = vmatprep.mubr.msk.f32.mxu0 %vm11091_vm0, %v11092_v1 }
 0x5fc   : > { %10157 = vmatprep.subr.mxu0 %v11092_v1 }
 0x602   : > { %10155 = vmatmul.mubr.f32.vlgmr.msra.gmra.mrb[6].mxu0 %v11514_v23 }
 0x603   : > { %10158 = vmatpush3.msra.mxu0 %v3285_v33  ;;  %10159 = vmatprep.mubr.msk.f32.mxu0 %vm11091_vm0, %v11092_v1 }
 0x604   : > { %10162 = vmatprep.subr.mxu0 %v11092_v1 }
 0x60a   : > { %10160 = vmatmul.mubr.f32.vlgmr.msra.gmra.mrb[6].mxu0 %v11508_v20 }
 0x60b   : > { %10163 = vmatpush3.msra.mxu0 %v3207_v31  ;;  %10164 = vmatprep.mubr.msk.f32.mxu0 %vm11091_vm0, %v11092_v1 }
 0x60c   : > { %10197 = vmatprep.subr.mxu0 %v11092_v1 }
 0x612   : > { %10165 = vmatmul.mubr.f32.vlgmr.msra.gmra.mrb[6].mxu0 %v11508_v20 }
 0x613   : > { %10199 = vmatprep.mubr.msk.f32.mxu0 %vm11091_vm0, %v11092_v1 }
 0x6e5   : > { %v3648_v35 = vpop.f32.mrb[6].mxu0 }
 0x6e6   : > { %v3652_v36 = vmul.f32 0.11111111, %v3648_v35  ;;  %v10166_v37 = vpop.f32.mrb[7].mxu0 }
 0x6e8   : > { %v3653_v38 = vadd.f32 %v11503_v13, %v3652_v36 }
 0x6ea   : > { %v3655_v39 = vand.u32 4294901760, %v3653_v38 }
 0x6ec   : > { %v3732_v40 = vsub.f32 %v3653_v38, %v3655_v39  ;;  %10168 = vmatpush3.msra.mxu1 %v3655_v39 }
 0x6ed   : > { %10170 = vmatmul.mubr.f32.vlgmr.msra.gmra.mrb[6].mxu1 %v11518_v26  ;;  %10172 = vmatprep.subr.mxu1 %v11092_v1 }
 0x6ee   : > { %v3733_v41 = vand.u32 4294901760, %v3732_v40  ;;  %10174 = vmatprep.mubr.msk.f32.mxu1 %vm11091_vm0, %v11092_v1 }
 0x6f0   : > { %v3734_v42 = vsub.f32 %v3732_v40, %v3733_v41 }
 0x6f2   : > { %v3735_v43 = vand.u32 4294901760, %v3734_v42 }
 0x6f4   : > { %10173 = vmatpush3.msra.mxu1 %v3735_v43 }
 0x6f5   : > { %10175 = vmatmul.mubr.f32.vlgmr.msra.gmra.mrb[6].mxu1 %v11508_v20  ;;  %10177 = vmatprep.subr.mxu1 %v11092_v1 }
 0x6f6   : > { %10178 = vmatpush3.msra.mxu1 %v3732_v40  ;;  %10179 = vmatprep.mubr.msk.f32.mxu1 %vm11091_vm0, %v11092_v1 }
 0x6f7   : > { %10182 = vmatprep.subr.mxu1 %v11092_v1 }
 0x6fd   : > { %10180 = vmatmul.mubr.f32.vlgmr.msra.gmra.mrb[6].mxu1 %v11511_v21 }
 0x6fe   : > { %10183 = vmatpush3.msra.mxu1 %v3655_v39  ;;  %10184 = vmatprep.mubr.msk.f32.mxu1 %vm11091_vm0, %v11092_v1 }
 0x6ff   : > { %10187 = vmatprep.subr.mxu1 %v11092_v1 }
 0x705   : > { %10185 = vmatmul.mubr.f32.vlgmr.msra.gmra.mrb[6].mxu1 %v11514_v23 }
 0x706   : > { %10188 = vmatpush3.msra.mxu1 %v3733_v41  ;;  %10189 = vmatprep.mubr.msk.f32.mxu1 %vm11091_vm0, %v11092_v1 }
 0x707   : > { %10192 = vmatprep.subr.mxu1 %v11092_v1 }
 0x70d   : > { %10190 = vmatmul.mubr.f32.vlgmr.msra.gmra.mrb[6].mxu1 %v11508_v20 }
 0x70e   : > { %10193 = vmatpush3.msra.mxu1 %v3655_v39  ;;  %10194 = vmatprep.mubr.msk.f32.mxu1 %vm11091_vm0, %v11092_v1 }
 0x70f   : > { %10227 = vmatprep.subr.mxu1 %v11092_v1 }
 0x715   : > { %10195 = vmatmul.mubr.f32.vlgmr.msra.gmra.mrb[6].mxu1 %v11508_v20 }
 0x716   : > { %10229 = vmatprep.mubr.msk.f32.mxu1 %vm11091_vm0, %v11092_v1 }
 0x7e8   : > { %v4096_v44 = vpop.f32.mrb[6].mxu1 }
 0x7e9   : > { %v4100_v45 = vmul.f32 0.125, %v4096_v44  ;;  %v10196_v46 = vpop.f32.mrb[7].mxu1 }
 0x7eb   : > { %v4101_v47 = vadd.f32 %v11503_v13, %v4100_v45 }
 0x7ed   : > { %v4103_v48 = vand.u32 4294901760, %v4101_v47 }
 0x7ef   : > { %v4180_v49 = vsub.f32 %v4101_v47, %v4103_v48  ;;  %10198 = vmatpush3.msra.mxu0 %v4103_v48 }
 0x7f0   : > { %10200 = vmatmul.mubr.f32.vlgmr.msra.gmra.mrb[8].mxu0 %v11518_v26  ;;  %10202 = vmatprep.subr.mxu0 %v11092_v1 }
 0x7f1   : > { %v4181_v50 = vand.u32 4294901760, %v4180_v49  ;;  %10204 = vmatprep.mubr.msk.f32.mxu0 %vm11091_vm0, %v11092_v1 }
 0x7f3   : > { %v4182_v51 = vsub.f32 %v4180_v49, %v4181_v50 }
 0x7f5   : > { %v4183_v52 = vand.u32 4294901760, %v4182_v51 }
 0x7f7   : > { %10203 = vmatpush3.msra.mxu0 %v4183_v52 }
 0x7f8   : > { %10205 = vmatmul.mubr.f32.vlgmr.msra.gmra.mrb[8].mxu0 %v11508_v20  ;;  %10207 = vmatprep.subr.mxu0 %v11092_v1 }
 0x7f9   : > { %10208 = vmatpush3.msra.mxu0 %v4180_v49  ;;  %10209 = vmatprep.mubr.msk.f32.mxu0 %vm11091_vm0, %v11092_v1 }
 0x7fa   : > { %10212 = vmatprep.subr.mxu0 %v11092_v1 }
 0x800   : > { %10210 = vmatmul.mubr.f32.vlgmr.msra.gmra.mrb[8].mxu0 %v11511_v21 }
 0x801   : > { %10213 = vmatpush3.msra.mxu0 %v4103_v48  ;;  %10214 = vmatprep.mubr.msk.f32.mxu0 %vm11091_vm0, %v11092_v1 }
 0x802   : > { %10217 = vmatprep.subr.mxu0 %v11092_v1 }
 0x808   : > { %10215 = vmatmul.mubr.f32.vlgmr.msra.gmra.mrb[8].mxu0 %v11514_v23 }
 0x809   : > { %10218 = vmatpush3.msra.mxu0 %v4181_v50  ;;  %10219 = vmatprep.mubr.msk.f32.mxu0 %vm11091_vm0, %v11092_v1 }
 0x80a   : > { %10222 = vmatprep.subr.mxu0 %v11092_v1 }
 0x810   : > { %10220 = vmatmul.mubr.f32.vlgmr.msra.gmra.mrb[8].mxu0 %v11508_v20 }
 0x811   : > { %10223 = vmatpush3.msra.mxu0 %v4103_v48  ;;  %10224 = vmatprep.mubr.msk.f32.mxu0 %vm11091_vm0, %v11092_v1 }
 0x812   : > { %10257 = vmatprep.subr.mxu0 %v11092_v1 }
 0x818   : > { %10225 = vmatmul.mubr.f32.vlgmr.msra.gmra.mrb[8].mxu0 %v11508_v20 }
 0x819   : > { %10259 = vmatprep.mubr.msk.f32.mxu0 %vm11091_vm0, %v11092_v1 }
 0x8eb   : > { %v4544_v53 = vpop.f32.mrb[8].mxu0 }
 0x8ec   : > { %v4548_v54 = vmul.f32 0.14285715, %v4544_v53  ;;  %v10226_v55 = vpop.f32.mrb[9].mxu0 }
 0x8ee   : > { %v4549_v56 = vadd.f32 %v11503_v13, %v4548_v54 }
 0x8f0   : > { %v4551_v57 = vand.u32 4294901760, %v4549_v56 }
 0x8f2   : > { %v4628_v58 = vsub.f32 %v4549_v56, %v4551_v57  ;;  %10228 = vmatpush3.msra.mxu1 %v4551_v57 }
 0x8f3   : > { %10230 = vmatmul.mubr.f32.vlgmr.msra.gmra.mrb[8].mxu1 %v11518_v26  ;;  %10232 = vmatprep.subr.mxu1 %v11092_v1 }
 0x8f4   : > { %v4629_v59 = vand.u32 4294901760, %v4628_v58  ;;  %10234 = vmatprep.mubr.msk.f32.mxu1 %vm11091_vm0, %v11092_v1 }
 0x8f6   : > { %v4630_v60 = vsub.f32 %v4628_v58, %v4629_v59 }
 0x8f8   : > { %v4631_v61 = vand.u32 4294901760, %v4630_v60 }
 0x8fa   : > { %10233 = vmatpush3.msra.mxu1 %v4631_v61 }
 0x8fb   : > { %10235 = vmatmul.mubr.f32.vlgmr.msra.gmra.mrb[8].mxu1 %v11508_v20  ;;  %10237 = vmatprep.subr.mxu1 %v11092_v1 }
 0x8fc   : > { %10238 = vmatpush3.msra.mxu1 %v4628_v58  ;;  %10239 = vmatprep.mubr.msk.f32.mxu1 %vm11091_vm0, %v11092_v1 }
 0x8fd   : > { %10242 = vmatprep.subr.mxu1 %v11092_v1 }
 0x903   : > { %10240 = vmatmul.mubr.f32.vlgmr.msra.gmra.mrb[8].mxu1 %v11511_v21 }
 0x904   : > { %10243 = vmatpush3.msra.mxu1 %v4551_v57  ;;  %10244 = vmatprep.mubr.msk.f32.mxu1 %vm11091_vm0, %v11092_v1 }
 0x905   : > { %10247 = vmatprep.subr.mxu1 %v11092_v1 }
 0x90b   : > { %10245 = vmatmul.mubr.f32.vlgmr.msra.gmra.mrb[8].mxu1 %v11514_v23 }
 0x90c   : > { %10248 = vmatpush3.msra.mxu1 %v4629_v59  ;;  %10249 = vmatprep.mubr.msk.f32.mxu1 %vm11091_vm0, %v11092_v1 }
 0x90d   : > { %10252 = vmatprep.subr.mxu1 %v11092_v1 }
 0x913   : > { %10250 = vmatmul.mubr.f32.vlgmr.msra.gmra.mrb[8].mxu1 %v11508_v20 }
 0x914   : > { %10253 = vmatpush3.msra.mxu1 %v4551_v57  ;;  %10254 = vmatprep.mubr.msk.f32.mxu1 %vm11091_vm0, %v11092_v1 }
 0x915   : > { %10287 = vmatprep.subr.mxu1 %v11092_v1 }
 0x91b   : > { %10255 = vmatmul.mubr.f32.vlgmr.msra.gmra.mrb[8].mxu1 %v11508_v20 }
 0x91c   : > { %10289 = vmatprep.mubr.msk.f32.mxu1 %vm11091_vm0, %v11092_v1 }
 0x9ee   : > { %v4992_v62 = vpop.f32.mrb[8].mxu1 }
 0x9ef   : > { %v4996_v63 = vmul.f32 0.16666667, %v4992_v62  ;;  %v10256_v2 = vpop.f32.mrb[9].mxu1 }
 0x9f1   : > { %v4997_v3 = vadd.f32 %v11503_v13, %v4996_v63 }
 0x9f3   : > { %v4999_v4 = vand.u32 4294901760, %v4997_v3 }
 0x9f5   : > { %v5076_v5 = vsub.f32 %v4997_v3, %v4999_v4  ;;  %10258 = vmatpush3.msra.mxu0 %v4999_v4 }
 0x9f6   : > { %10260 = vmatmul.mubr.f32.vlgmr.msra.gmra.mrb[10].mxu0 %v11518_v26  ;;  %10262 = vmatprep.subr.mxu0 %v11092_v1 }
 0x9f7   : > { %v5077_v6 = vand.u32 4294901760, %v5076_v5  ;;  %10264 = vmatprep.mubr.msk.f32.mxu0 %vm11091_vm0, %v11092_v1 }
 0x9f9   : > { %v5078_v7 = vsub.f32 %v5076_v5, %v5077_v6 }
 0x9fb   : > { %v5079_v8 = vand.u32 4294901760, %v5078_v7 }
 0x9fd   : > { %10263 = vmatpush3.msra.mxu0 %v5079_v8 }
 0x9fe   : > { %10265 = vmatmul.mubr.f32.vlgmr.msra.gmra.mrb[10].mxu0 %v11508_v20  ;;  %10267 = vmatprep.subr.mxu0 %v11092_v1 }
 0x9ff   : > { %10268 = vmatpush3.msra.mxu0 %v5076_v5  ;;  %10269 = vmatprep.mubr.msk.f32.mxu0 %vm11091_vm0, %v11092_v1 }
 0xa00   : > { %10272 = vmatprep.subr.mxu0 %v11092_v1 }
 0xa06   : > { %10270 = vmatmul.mubr.f32.vlgmr.msra.gmra.mrb[10].mxu0 %v11511_v21 }
 0xa07   : > { %10273 = vmatpush3.msra.mxu0 %v4999_v4  ;;  %10274 = vmatprep.mubr.msk.f32.mxu0 %vm11091_vm0, %v11092_v1 }
 0xa08   : > { %10277 = vmatprep.subr.mxu0 %v11092_v1 }
 0xa0e   : > { %10275 = vmatmul.mubr.f32.vlgmr.msra.gmra.mrb[10].mxu0 %v11514_v23 }
 0xa0f   : > { %10278 = vmatpush3.msra.mxu0 %v5077_v6  ;;  %10279 = vmatprep.mubr.msk.f32.mxu0 %vm11091_vm0, %v11092_v1 }
 0xa10   : > { %10282 = vmatprep.subr.mxu0 %v11092_v1 }
 0xa16   : > { %10280 = vmatmul.mubr.f32.vlgmr.msra.gmra.mrb[10].mxu0 %v11508_v20 }
 0xa17   : > { %10283 = vmatpush3.msra.mxu0 %v4999_v4  ;;  %10284 = vmatprep.mubr.msk.f32.mxu0 %vm11091_vm0, %v11092_v1 }
 0xa18   : > { %10317 = vmatprep.subr.mxu0 %v11092_v1 }
 0xa1e   : > { %10285 = vmatmul.mubr.f32.vlgmr.msra.gmra.mrb[10].mxu0 %v11508_v20 }
 0xa1f   : > { %10319 = vmatprep.mubr.msk.f32.mxu0 %vm11091_vm0, %v11092_v1 }
 0xaf1   : > { %v5440_v9 = vpop.f32.mrb[10].mxu0 }
 0xaf2   : > { %v5444_v10 = vmul.f32 0.2, %v5440_v9  ;;  %v10286_v11 = vpop.f32.mrb[11].mxu0 }
 0xaf4   : > { %v5445_v12 = vadd.f32 %v11503_v13, %v5444_v10 }
 0xaf6   : > { %v5447_v14 = vand.u32 4294901760, %v5445_v12 }
 0xaf8   : > { %v5524_v15 = vsub.f32 %v5445_v12, %v5447_v14  ;;  %10288 = vmatpush3.msra.mxu1 %v5447_v14 }
 0xaf9   : > { %10290 = vmatmul.mubr.f32.vlgmr.msra.gmra.mrb[10].mxu1 %v11518_v26  ;;  %10292 = vmatprep.subr.mxu1 %v11092_v1 }
 0xafa   : > { %v5525_v16 = vand.u32 4294901760, %v5524_v15  ;;  %10294 = vmatprep.mubr.msk.f32.mxu1 %vm11091_vm0, %v11092_v1 }
 0xafc   : > { %v5526_v17 = vsub.f32 %v5524_v15, %v5525_v16 }
 0xafe   : > { %v5527_v18 = vand.u32 4294901760, %v5526_v17 }
 0xb00   : > { %10293 = vmatpush3.msra.mxu1 %v5527_v18 }
 0xb01   : > { %10295 = vmatmul.mubr.f32.vlgmr.msra.gmra.mrb[10].mxu1 %v11508_v20  ;;  %10297 = vmatprep.subr.mxu1 %v11092_v1 }
 0xb02   : > { %10298 = vmatpush3.msra.mxu1 %v5524_v15  ;;  %10299 = vmatprep.mubr.msk.f32.mxu1 %vm11091_vm0, %v11092_v1 }
 0xb03   : > { %10302 = vmatprep.subr.mxu1 %v11092_v1 }
 0xb09   : > { %10300 = vmatmul.mubr.f32.vlgmr.msra.gmra.mrb[10].mxu1 %v11511_v21 }
 0xb0a   : > { %10303 = vmatpush3.msra.mxu1 %v5447_v14  ;;  %10304 = vmatprep.mubr.msk.f32.mxu1 %vm11091_vm0, %v11092_v1 }
 0xb0b   : > { %10307 = vmatprep.subr.mxu1 %v11092_v1 }
 0xb11   : > { %10305 = vmatmul.mubr.f32.vlgmr.msra.gmra.mrb[10].mxu1 %v11514_v23 }
 0xb12   : > { %10308 = vmatpush3.msra.mxu1 %v5525_v16  ;;  %10309 = vmatprep.mubr.msk.f32.mxu1 %vm11091_vm0, %v11092_v1 }
 0xb13   : > { %10312 = vmatprep.subr.mxu1 %v11092_v1 }
 0xb19   : > { %10310 = vmatmul.mubr.f32.vlgmr.msra.gmra.mrb[10].mxu1 %v11508_v20 }
 0xb1a   : > { %10313 = vmatpush3.msra.mxu1 %v5447_v14  ;;  %10314 = vmatprep.mubr.msk.f32.mxu1 %vm11091_vm0, %v11092_v1 }
 0xb1b   : > { %10347 = vmatprep.subr.mxu1 %v11092_v1 }
 0xb21   : > { %10315 = vmatmul.mubr.f32.vlgmr.msra.gmra.mrb[10].mxu1 %v11508_v20 }
 0xb22   : > { %10349 = vmatprep.mubr.msk.f32.mxu1 %vm11091_vm0, %v11092_v1 }
 0xbf4   : > { %v5888_v19 = vpop.f32.mrb[10].mxu1 }
 0xbf5   : > { %v5892_v22 = vmul.f32 0.25, %v5888_v19  ;;  %v10316_v24 = vpop.f32.mrb[11].mxu1 }
 0xbf7   : > { %v5893_v25 = vadd.f32 %v11503_v13, %v5892_v22 }
 0xbf9   : > { %v5895_v27 = vand.u32 4294901760, %v5893_v25 }
 0xbfb   : > { %v5972_v28 = vsub.f32 %v5893_v25, %v5895_v27  ;;  %10318 = vmatpush3.msra.mxu0 %v5895_v27 }
 0xbfc   : > { %10320 = vmatmul.mubr.f32.vlgmr.msra.gmra.mrb[12].mxu0 %v11518_v26  ;;  %10322 = vmatprep.subr.mxu0 %v11092_v1 }
 0xbfd   : > { %v5973_v29 = vand.u32 4294901760, %v5972_v28  ;;  %10324 = vmatprep.mubr.msk.f32.mxu0 %vm11091_vm0, %v11092_v1 }
 0xbff   : > { %v5974_v30 = vsub.f32 %v5972_v28, %v5973_v29 }
 0xc01   : > { %v5975_v31 = vand.u32 4294901760, %v5974_v30 }
 0xc03   : > { %10323 = vmatpush3.msra.mxu0 %v5975_v31 }
 0xc04   : > { %10325 = vmatmul.mubr.f32.vlgmr.msra.gmra.mrb[12].mxu0 %v11508_v20  ;;  %10327 = vmatprep.subr.mxu0 %v11092_v1 }
 0xc05   : > { %10328 = vmatpush3.msra.mxu0 %v5972_v28  ;;  %10329 = vmatprep.mubr.msk.f32.mxu0 %vm11091_vm0, %v11092_v1 }
 0xc06   : > { %10332 = vmatprep.subr.mxu0 %v11092_v1 }
 0xc0c   : > { %10330 = vmatmul.mubr.f32.vlgmr.msra.gmra.mrb[12].mxu0 %v11511_v21 }
 0xc0d   : > { %10333 = vmatpush3.msra.mxu0 %v5895_v27  ;;  %10334 = vmatprep.mubr.msk.f32.mxu0 %vm11091_vm0, %v11092_v1 }
 0xc0e   : > { %10337 = vmatprep.subr.mxu0 %v11092_v1 }
 0xc14   : > { %10335 = vmatmul.mubr.f32.vlgmr.msra.gmra.mrb[12].mxu0 %v11514_v23 }
 0xc15   : > { %10338 = vmatpush3.msra.mxu0 %v5973_v29  ;;  %10339 = vmatprep.mubr.msk.f32.mxu0 %vm11091_vm0, %v11092_v1 }
 0xc16   : > { %10342 = vmatprep.subr.mxu0 %v11092_v1 }
 0xc1c   : > { %10340 = vmatmul.mubr.f32.vlgmr.msra.gmra.mrb[12].mxu0 %v11508_v20 }
 0xc1d   : > { %10343 = vmatpush3.msra.mxu0 %v5895_v27  ;;  %10344 = vmatprep.mubr.msk.f32.mxu0 %vm11091_vm0, %v11092_v1 }
 0xc1e   : > { %10377 = vmatprep.subr.mxu0 %v11092_v1 }
 0xc24   : > { %10345 = vmatmul.mubr.f32.vlgmr.msra.gmra.mrb[12].mxu0 %v11508_v20 }
 0xc25   : > { %10379 = vmatprep.mubr.msk.f32.mxu0 %vm11091_vm0, %v11092_v1 }
 0xcf7   : > { %v6336_v32 = vpop.f32.mrb[12].mxu0 }
 0xcf8   : > { %v6340_v33 = vmul.f32 0.33333334, %v6336_v32  ;;  %v10346_v0 = vpop.f32.mrb[13].mxu0 }
 0xcfa   : > { %v6341_v34 = vadd.f32 %v11503_v13, %v6340_v33 }
 0xcfc   : > { %v6343_v35 = vand.u32 4294901760, %v6341_v34 }
 0xcfe   : > { %v6420_v36 = vsub.f32 %v6341_v34, %v6343_v35  ;;  %10348 = vmatpush3.msra.mxu1 %v6343_v35 }
 0xcff   : > { %10350 = vmatmul.mubr.f32.vlgmr.msra.gmra.mrb[12].mxu1 %v11518_v26  ;;  %10352 = vmatprep.subr.mxu1 %v11092_v1 }
 0xd00   : > { %v6421_v37 = vand.u32 4294901760, %v6420_v36  ;;  %10354 = vmatprep.mubr.msk.f32.mxu1 %vm11091_vm0, %v11092_v1 }
 0xd02   : > { %v6422_v38 = vsub.f32 %v6420_v36, %v6421_v37 }
 0xd04   : > { %v6423_v39 = vand.u32 4294901760, %v6422_v38 }
 0xd06   : > { %10353 = vmatpush3.msra.mxu1 %v6423_v39 }
 0xd07   : > { %10355 = vmatmul.mubr.f32.vlgmr.msra.gmra.mrb[12].mxu1 %v11508_v20  ;;  %10357 = vmatprep.subr.mxu1 %v11092_v1 }
 0xd08   : > { %10358 = vmatpush3.msra.mxu1 %v6420_v36  ;;  %10359 = vmatprep.mubr.msk.f32.mxu1 %vm11091_vm0, %v11092_v1 }
 0xd09   : > { %10362 = vmatprep.subr.mxu1 %v11092_v1 }
 0xd0f   : > { %10360 = vmatmul.mubr.f32.vlgmr.msra.gmra.mrb[12].mxu1 %v11511_v21 }
 0xd10   : > { %10363 = vmatpush3.msra.mxu1 %v6343_v35  ;;  %10364 = vmatprep.mubr.msk.f32.mxu1 %vm11091_vm0, %v11092_v1 }
 0xd11   : > { %10367 = vmatprep.subr.mxu1 %v11092_v1 }
 0xd17   : > { %10365 = vmatmul.mubr.f32.vlgmr.msra.gmra.mrb[12].mxu1 %v11514_v23 }
 0xd18   : > { %10368 = vmatpush3.msra.mxu1 %v6421_v37  ;;  %10369 = vmatprep.mubr.msk.f32.mxu1 %vm11091_vm0, %v11092_v1 }
 0xd19   : > { %10372 = vmatprep.subr.mxu1 %v11092_v1 }
 0xd1f   : > { %10370 = vmatmul.mubr.f32.vlgmr.msra.gmra.mrb[12].mxu1 %v11508_v20 }
 0xd20   : > { %10373 = vmatpush3.msra.mxu1 %v6343_v35  ;;  %10374 = vmatprep.mubr.msk.f32.mxu1 %vm11091_vm0, %v11092_v1 }
 0xd21   : > { %10382 = vmatprep.subr.mxu1 %v11092_v1 }
 0xd27   : > { %10375 = vmatmul.mubr.f32.vlgmr.msra.gmra.mrb[12].mxu1 %v11508_v20 }
 0xd28   : > { %10384 = vmatprep.mubr.msk.f32.mxu1 %vm11091_vm0, %v11092_v1 }
 0xdfa   : > { %v6784_v40 = vpop.f32.mrb[12].mxu1 }
 0xdfb   : > { %v6788_v41 = vmul.f32 0.5, %v6784_v40  ;;  %v10376_v42 = vpop.f32.mrb[13].mxu1 }
 0xdfd   : > { %v6789_v43 = vadd.f32 %v11503_v13, %v6788_v41 }
 0xdff   : > { %v6791_v44 = vand.u32 4294901760, %v6789_v43 }
 0xe01   : > { %v6868_v45 = vsub.f32 %v6789_v43, %v6791_v44  ;;  %10378 = vmatpush3.msra.mxu0 %v6791_v44 }
 0xe02   : > { %10380 = vmatmul.mubr.f32.vlgmr.msra.gmra.mrb[14].mxu0 %v11518_v26  ;;  %10387 = vmatprep.subr.mxu0 %v11092_v1 }
 0xe03   : > { %10388 = vmatpush3.msra.mxu0 %v6868_v45  ;;  %10389 = vmatprep.mubr.msk.f32.mxu0 %vm11091_vm0, %v11092_v1  ;;  %v6869_v46 = vand.u32 4294901760, %v6868_v45 }
 0xe04   : > { %10397 = vmatprep.subr.mxu0 %v11092_v1 }
 0xe05   : > { %v6870_v47 = vsub.f32 %v6868_v45, %v6869_v46 }
 0xe06   : > { %10390 = vmatmul.mubr.f32.vlgmr.msra.gmra.mrb[16].mxu0 %v11511_v21 }
 0xe07   : > { %10398 = vmatpush3.msra.mxu0 %v6869_v46  ;;  %v6871_v48 = vand.u32 4294901760, %v6870_v47  ;;  %10399 = vmatprep.mubr.msk.f32.mxu0 %vm11091_vm0, %v11092_v1 }
 0xe08   : > { %10407 = vmatprep.subr.mxu0 %v11092_v1 }
 0xe09   : > { %10383 = vmatpush3.msra.mxu1 %v6871_v48 }
 0xe0a   : > { %10385 = vmatmul.mubr.f32.vlgmr.msra.gmra.mrb[14].mxu1 %v11508_v20  ;;  %10392 = vmatprep.subr.mxu1 %v11092_v1 }
 0xe0b   : > { %10400 = vmatmul.mubr.f32.vlgmr.msra.gmra.mrb[18].mxu0 %v11508_v20  ;;  %10393 = vmatpush3.msra.mxu1 %v6791_v44 }
 0xe0c   : > { %10394 = vmatprep.mubr.msk.f32.mxu1 %vm11091_vm0, %v11092_v1  ;;  %10402 = vmatprep.subr.mxu1 %v11092_v1 }
 0xe0d   : > { %10409 = vmatprep.mubr.msk.f32.mxu0 %vm11091_vm0, %v11092_v1 }
 0xe0e   : > { %10395 = vmatmul.mubr.f32.vlgmr.msra.gmra.mrb[16].mxu1 %v11514_v23 }
 0xe0f   : > { %10403 = vmatpush3.msra.mxu1 %v6791_v44  ;;  %10404 = vmatprep.mubr.msk.f32.mxu1 %vm11091_vm0, %v11092_v1 }
 0xe10   : > { %10437 = vmatprep.subr.mxu1 %v11092_v1 }
 0xe12   : > { %10405 = vmatmul.mubr.f32.vlgmr.msra.gmra.mrb[18].mxu1 %v11508_v20 }
 0xe13   : > { %10439 = vmatprep.mubr.msk.f32.mxu1 %vm11091_vm0, %v11092_v1 }
 0xed5   : > { %v6862_v21 = vpop.f32.mrb[14].mxu0 }
 0xed6   : > { %v10381_v26 = vpop.f32.mrb[15].mxu0 }
 0xed9   : > { %v7012_v49 = vpop.f32.mrb[16].mxu0 }
 0xeda   : > { %v10391_v50 = vpop.f32.mrb[17].mxu0 }
 0xedd   : > { %v6938_v51 = vpop.f32.mrb[14].mxu1 }
 0xede   : > { %v6939_v52 = vadd.f32 %v6938_v51, %v6862_v21  ;;  %v7160_v53 = vpop.f32.mrb[18].mxu0  ;;  %v10386_v54 = vpop.f32.mrb[15].mxu1 }
 0xedf   : > { %v10401_v23 = vpop.f32.mrb[19].mxu0 }
 0xee0   : > { %v7013_v55 = vadd.f32 %v7012_v49, %v6939_v52 }
 0xee1   : > { %v7086_v56 = vpop.f32.mrb[16].mxu1 }
 0xee2   : > { %v7087_v57 = vadd.f32 %v7086_v56, %v7013_v55  ;;  %v10396_v58 = vpop.f32.mrb[17].mxu1 }
 0xee4   : > { %v7161_v59 = vadd.f32 %v7160_v53, %v7087_v57 }
 0xee5   : > { %v7232_v60 = vpop.f32.mrb[18].mxu1 }
 0xee6   : > { %v7233_v61 = vadd.f32 %v7232_v60, %v7161_v59  ;;  %v10406_v20 = vpop.f32.mrb[19].mxu1 }
 0xee8   : > { %v7236_v62 = vadd.f32 %v11503_v13, %v7233_v61 }
 0xeea   : > { %v7238_v63 = vsel %vm2754_vm9, %v7236_v62, 0  ;;  %v7241_v2 = vand.u32 4294901760, %v7236_v62 }
 0xeeb   : > { %v7306_v3 = vand.u32 4294901760, %v7238_v63 }
 0xeec   : > { %v7318_v4 = vsub.f32 %v7236_v62, %v7241_v2  ;;  %10408 = vmatpush3.msra.mxu0 %v7241_v2 }
 0xeed   : > { %v7307_v5 = vsub.f32 %v7238_v63, %v7306_v3  ;;  %10412 = vmatprep.subr.mxu0 %v11092_v1 }
 0xeee   : > { %v7319_v6 = vand.u32 4294901760, %v7318_v4 }
 0xeef   : > { %v7308_v7 = vand.u32 4294901760, %v7307_v5 }
 0xef0   : > { %v7320_v8 = vsub.f32 %v7318_v4, %v7319_v6 }
 0xef1   : > { %v7309_v9 = vsub.f32 %v7307_v5, %v7308_v7 }
 0xef2   : > { %v7321_v10 = vand.u32 4294901760, %v7320_v8 }
 0xef3   : > { %v7310_v11 = vand.u32 4294901760, %v7309_v9 }
 0xef5   : > { %10410 = vmatmul.mubr.f32.vlgmr.msra.gmra.mrb[20].mxu0 %v7310_v11 }
 0xef6   : > { %10413 = vmatpush3.msra.mxu0 %v7321_v10  ;;  %10414 = vmatprep.mubr.msk.f32.mxu0 %vm11091_vm0, %v11092_v1 }
 0xef7   : > { %10417 = vmatprep.subr.mxu0 %v11092_v1 }
 0xefd   : > { %10415 = vmatmul.mubr.f32.vlgmr.msra.gmra.mrb[20].mxu0 %v7306_v3 }
 0xefe   : > { %10418 = vmatpush3.msra.mxu0 %v7318_v4  ;;  %10419 = vmatprep.mubr.msk.f32.mxu0 %vm11091_vm0, %v11092_v1 }
 0xeff   : > { %10422 = vmatprep.subr.mxu0 %v11092_v1 }
 0xf05   : > { %10420 = vmatmul.mubr.f32.vlgmr.msra.gmra.mrb[20].mxu0 %v7307_v5 }
 0xf06   : > { %10423 = vmatpush3.msra.mxu0 %v7241_v2  ;;  %10424 = vmatprep.mubr.msk.f32.mxu0 %vm11091_vm0, %v11092_v1 }
 0xf07   : > { %10427 = vmatprep.subr.mxu0 %v11092_v1 }
 0xf0d   : > { %10425 = vmatmul.mubr.f32.vlgmr.msra.gmra.mrb[20].mxu0 %v7308_v7 }
 0xf0e   : > { %10428 = vmatpush3.msra.mxu0 %v7319_v6  ;;  %10429 = vmatprep.mubr.msk.f32.mxu0 %vm11091_vm0, %v11092_v1 }
 0xf0f   : > { %10432 = vmatprep.subr.mxu0 %v11092_v1 }
 0xf15   : > { %10430 = vmatmul.mubr.f32.vlgmr.msra.gmra.mrb[20].mxu0 %v7306_v3 }
 0xf16   : > { %10433 = vmatpush3.msra.mxu0 %v7241_v2  ;;  %10434 = vmatprep.mubr.msk.f32.mxu0 %vm11091_vm0, %v11092_v1 }
 0xf17   : > { %10467 = vmatprep.subr.mxu0 %v11092_v1 }
 0xf1d   : > { %10435 = vmatmul.mubr.f32.vlgmr.msra.gmra.mrb[20].mxu0 %v7306_v3 }
 0xf1e   : > { %10469 = vmatprep.mubr.msk.f32.mxu0 %vm11091_vm0, %v11092_v1 }
 0xff0   : > { %v7682_v13 = vpop.f32.mrb[20].mxu0 }
 0xff1   : > { %v7687_v12 = vsel %vm2754_vm9, %v7682_v13, 0  ;;  %v7690_v14 = vand.u32 4294901760, %v7682_v13  ;;  %v10436_v15 = vpop.f32.mrb[21].mxu0 }
 0xff2   : > { %v7755_v16 = vand.u32 4294901760, %v7687_v12 }
 0xff3   : > { %v7767_v17 = vsub.f32 %v7682_v13, %v7690_v14  ;;  %10438 = vmatpush3.msra.mxu1 %v7690_v14 }
 0xff4   : > { %v7756_v18 = vsub.f32 %v7687_v12, %v7755_v16  ;;  %10442 = vmatprep.subr.mxu1 %v11092_v1 }
 0xff5   : > { %v7768_v19 = vand.u32 4294901760, %v7767_v17 }
 0xff6   : > { %v7757_v22 = vand.u32 4294901760, %v7756_v18 }
 0xff7   : > { %v7769_v24 = vsub.f32 %v7767_v17, %v7768_v19 }
 0xff8   : > { %v7758_v25 = vsub.f32 %v7756_v18, %v7757_v22 }
 0xff9   : > { %v7770_v27 = vand.u32 4294901760, %v7769_v24 }
 0xffa   : > { %v7759_v28 = vand.u32 4294901760, %v7758_v25 }
 0xffc   : > { %10440 = vmatmul.mubr.f32.vlgmr.msra.gmra.mrb[20].mxu1 %v7759_v28 }
 0xffd   : > { %10443 = vmatpush3.msra.mxu1 %v7770_v27  ;;  %10444 = vmatprep.mubr.msk.f32.mxu1 %vm11091_vm0, %v11092_v1 }
 0xffe   : > { %10447 = vmatprep.subr.mxu1 %v11092_v1 }
0x1004   : > { %10445 = vmatmul.mubr.f32.vlgmr.msra.gmra.mrb[20].mxu1 %v7755_v16 }
0x1005   : > { %10448 = vmatpush3.msra.mxu1 %v7767_v17  ;;  %10449 = vmatprep.mubr.msk.f32.mxu1 %vm11091_vm0, %v11092_v1 }
0x1006   : > { %10452 = vmatprep.subr.mxu1 %v11092_v1 }
0x100c   : > { %10450 = vmatmul.mubr.f32.vlgmr.msra.gmra.mrb[20].mxu1 %v7756_v18 }
0x100d   : > { %10453 = vmatpush3.msra.mxu1 %v7690_v14  ;;  %10454 = vmatprep.mubr.msk.f32.mxu1 %vm11091_vm0, %v11092_v1 }
0x100e   : > { %10457 = vmatprep.subr.mxu1 %v11092_v1 }
0x1014   : > { %10455 = vmatmul.mubr.f32.vlgmr.msra.gmra.mrb[20].mxu1 %v7757_v22 }
0x1015   : > { %10458 = vmatpush3.msra.mxu1 %v7768_v19  ;;  %10459 = vmatprep.mubr.msk.f32.mxu1 %vm11091_vm0, %v11092_v1 }
0x1016   : > { %10462 = vmatprep.subr.mxu1 %v11092_v1 }
0x101c   : > { %10460 = vmatmul.mubr.f32.vlgmr.msra.gmra.mrb[20].mxu1 %v7755_v16 }
0x101d   : > { %10463 = vmatpush3.msra.mxu1 %v7690_v14  ;;  %10464 = vmatprep.mubr.msk.f32.mxu1 %vm11091_vm0, %v11092_v1 }
0x101e   : > { %10497 = vmatprep.subr.mxu1 %v11092_v1 }
0x1024   : > { %10465 = vmatmul.mubr.f32.vlgmr.msra.gmra.mrb[20].mxu1 %v7755_v16 }
0x1025   : > { %10499 = vmatprep.mubr.msk.f32.mxu1 %vm11091_vm0, %v11092_v1 }
0x10f7   : > { %v8131_v29 = vpop.f32.mrb[20].mxu1 }
0x10f8   : > { %v8136_v30 = vsel %vm2754_vm9, %v8131_v29, 0  ;;  %v8139_v31 = vand.u32 4294901760, %v8131_v29  ;;  %v10466_v32 = vpop.f32.mrb[21].mxu1 }
0x10f9   : > { %v8204_v33 = vand.u32 4294901760, %v8136_v30 }
0x10fa   : > { %v8216_v0 = vsub.f32 %v8131_v29, %v8139_v31  ;;  %10468 = vmatpush3.msra.mxu0 %v8139_v31 }
0x10fb   : > { %v8205_v34 = vsub.f32 %v8136_v30, %v8204_v33  ;;  %10472 = vmatprep.subr.mxu0 %v11092_v1 }
0x10fc   : > { %v8217_v35 = vand.u32 4294901760, %v8216_v0 }
0x10fd   : > { %v8206_v36 = vand.u32 4294901760, %v8205_v34 }
0x10fe   : > { %v8218_v37 = vsub.f32 %v8216_v0, %v8217_v35 }
0x10ff   : > { %v8207_v38 = vsub.f32 %v8205_v34, %v8206_v36 }
0x1100   : > { %v8219_v39 = vand.u32 4294901760, %v8218_v37 }
0x1101   : > { %v8208_v40 = vand.u32 4294901760, %v8207_v38 }
0x1103   : > { %10470 = vmatmul.mubr.f32.vlgmr.msra.gmra.mrb[22].mxu0 %v8208_v40 }
0x1104   : > { %10473 = vmatpush3.msra.mxu0 %v8219_v39  ;;  %10474 = vmatprep.mubr.msk.f32.mxu0 %vm11091_vm0, %v11092_v1 }
0x1105   : > { %10477 = vmatprep.subr.mxu0 %v11092_v1 }
0x110b   : > { %10475 = vmatmul.mubr.f32.vlgmr.msra.gmra.mrb[22].mxu0 %v8204_v33 }
0x110c   : > { %10478 = vmatpush3.msra.mxu0 %v8216_v0  ;;  %10479 = vmatprep.mubr.msk.f32.mxu0 %vm11091_vm0, %v11092_v1 }
0x110d   : > { %10482 = vmatprep.subr.mxu0 %v11092_v1 }
0x1113   : > { %10480 = vmatmul.mubr.f32.vlgmr.msra.gmra.mrb[22].mxu0 %v8205_v34 }
0x1114   : > { %10483 = vmatpush3.msra.mxu0 %v8139_v31  ;;  %10484 = vmatprep.mubr.msk.f32.mxu0 %vm11091_vm0, %v11092_v1 }
0x1115   : > { %10487 = vmatprep.subr.mxu0 %v11092_v1 }
0x111b   : > { %10485 = vmatmul.mubr.f32.vlgmr.msra.gmra.mrb[22].mxu0 %v8206_v36 }
0x111c   : > { %10488 = vmatpush3.msra.mxu0 %v8217_v35  ;;  %10489 = vmatprep.mubr.msk.f32.mxu0 %vm11091_vm0, %v11092_v1 }
0x111d   : > { %10492 = vmatprep.subr.mxu0 %v11092_v1 }
0x1123   : > { %10490 = vmatmul.mubr.f32.vlgmr.msra.gmra.mrb[22].mxu0 %v8204_v33 }
0x1124   : > { %10493 = vmatpush3.msra.mxu0 %v8139_v31  ;;  %10494 = vmatprep.mubr.msk.f32.mxu0 %vm11091_vm0, %v11092_v1 }
0x1125   : > { %10527 = vmatprep.subr.mxu0 %v11092_v1 }
0x112b   : > { %10495 = vmatmul.mubr.f32.vlgmr.msra.gmra.mrb[22].mxu0 %v8204_v33 }
0x112c   : > { %10529 = vmatprep.mubr.msk.f32.mxu0 %vm11091_vm0, %v11092_v1 }
0x11fe   : > { %v8580_v41 = vpop.f32.mrb[22].mxu0 }
0x11ff   : > { %v8585_v42 = vsel %vm2754_vm9, %v8580_v41, 0  ;;  %v8588_v43 = vand.u32 4294901760, %v8580_v41  ;;  %v10496_v44 = vpop.f32.mrb[23].mxu0 }
0x1200   : > { %v8653_v45 = vand.u32 4294901760, %v8585_v42 }
0x1201   : > { %v8665_v46 = vsub.f32 %v8580_v41, %v8588_v43  ;;  %10498 = vmatpush3.msra.mxu1 %v8588_v43 }
0x1202   : > { %v8654_v47 = vsub.f32 %v8585_v42, %v8653_v45  ;;  %10502 = vmatprep.subr.mxu1 %v11092_v1 }
0x1203   : > { %v8666_v48 = vand.u32 4294901760, %v8665_v46 }
0x1204   : > { %v8655_v21 = vand.u32 4294901760, %v8654_v47 }
0x1205   : > { %v8667_v26 = vsub.f32 %v8665_v46, %v8666_v48 }
0x1206   : > { %v8656_v49 = vsub.f32 %v8654_v47, %v8655_v21 }
0x1207   : > { %v8668_v50 = vand.u32 4294901760, %v8667_v26 }
0x1208   : > { %v8657_v51 = vand.u32 4294901760, %v8656_v49 }
0x120a   : > { %10500 = vmatmul.mubr.f32.vlgmr.msra.gmra.mrb[22].mxu1 %v8657_v51 }
0x120b   : > { %10503 = vmatpush3.msra.mxu1 %v8668_v50  ;;  %10504 = vmatprep.mubr.msk.f32.mxu1 %vm11091_vm0, %v11092_v1 }
0x120c   : > { %10507 = vmatprep.subr.mxu1 %v11092_v1 }
0x1212   : > { %10505 = vmatmul.mubr.f32.vlgmr.msra.gmra.mrb[22].mxu1 %v8653_v45 }
0x1213   : > { %10508 = vmatpush3.msra.mxu1 %v8665_v46  ;;  %10509 = vmatprep.mubr.msk.f32.mxu1 %vm11091_vm0, %v11092_v1 }
0x1214   : > { %10512 = vmatprep.subr.mxu1 %v11092_v1 }
0x121a   : > { %10510 = vmatmul.mubr.f32.vlgmr.msra.gmra.mrb[22].mxu1 %v8654_v47 }
0x121b   : > { %10513 = vmatpush3.msra.mxu1 %v8588_v43  ;;  %10514 = vmatprep.mubr.msk.f32.mxu1 %vm11091_vm0, %v11092_v1 }
0x121c   : > { %10517 = vmatprep.subr.mxu1 %v11092_v1 }
0x1222   : > { %10515 = vmatmul.mubr.f32.vlgmr.msra.gmra.mrb[22].mxu1 %v8655_v21 }
0x1223   : > { %10518 = vmatpush3.msra.mxu1 %v8666_v48  ;;  %10519 = vmatprep.mubr.msk.f32.mxu1 %vm11091_vm0, %v11092_v1 }
0x1224   : > { %10522 = vmatprep.subr.mxu1 %v11092_v1 }
0x122a   : > { %10520 = vmatmul.mubr.f32.vlgmr.msra.gmra.mrb[22].mxu1 %v8653_v45 }
0x122b   : > { %10523 = vmatpush3.msra.mxu1 %v8588_v43  ;;  %10524 = vmatprep.mubr.msk.f32.mxu1 %vm11091_vm0, %v11092_v1 }
0x1232   : > { %10525 = vmatmul.mubr.f32.vlgmr.msra.gmra.mrb[22].mxu1 %v8653_v45 }
0x1305   : > { %v9029_v52 = vpop.f32.mrb[22].mxu1 }
0x1306   : > { %v9034_v53 = vsel %vm2754_vm9, %v9029_v52, 0  ;;  %v9037_v54 = vand.u32 4294901760, %v9029_v52  ;;  %v10526_v23 = vpop.f32.mrb[23].mxu1 }
0x1307   : > { %v9102_v55 = vand.u32 4294901760, %v9034_v53 }
0x1308   : > { %v9114_v56 = vsub.f32 %v9029_v52, %v9037_v54  ;;  %10528 = vmatpush3.msra.mxu0 %v9037_v54 }
0x1309   : > { %v9103_v57 = vsub.f32 %v9034_v53, %v9102_v55  ;;  %10532 = vmatprep.subr.mxu0 %v11092_v1 }
0x130a   : > { %v9115_v58 = vand.u32 4294901760, %v9114_v56 }
0x130b   : > { %v9104_v59 = vand.u32 4294901760, %v9103_v57 }
0x130c   : > { %v9116_v60 = vsub.f32 %v9114_v56, %v9115_v58 }
0x130d   : > { %v9105_v61 = vsub.f32 %v9103_v57, %v9104_v59 }
0x130e   : > { %v9117_v20 = vand.u32 4294901760, %v9116_v60 }
0x130f   : > { %v9106_v62 = vand.u32 4294901760, %v9105_v61 }
0x1311   : > { %10530 = vmatmul.mubr.f32.vlgmr.msra.gmra.mrb[24].mxu0 %v9106_v62 }
0x1312   : > { %10533 = vmatpush3.msra.mxu0 %v9117_v20  ;;  %10534 = vmatprep.mubr.msk.f32.mxu0 %vm11091_vm0, %v11092_v1 }
0x1313   : > { %10537 = vmatprep.subr.mxu0 %v11092_v1 }
0x1319   : > { %10535 = vmatmul.mubr.f32.vlgmr.msra.gmra.mrb[24].mxu0 %v9102_v55 }
0x131a   : > { %10538 = vmatpush3.msra.mxu0 %v9114_v56  ;;  %10539 = vmatprep.mubr.msk.f32.mxu0 %vm11091_vm0, %v11092_v1 }
0x131b   : > { %10542 = vmatprep.subr.mxu0 %v11092_v1 }
0x1321   : > { %10540 = vmatmul.mubr.f32.vlgmr.msra.gmra.mrb[24].mxu0 %v9103_v57 }
0x1322   : > { %10543 = vmatpush3.msra.mxu0 %v9037_v54  ;;  %10544 = vmatprep.mubr.msk.f32.mxu0 %vm11091_vm0, %v11092_v1 }
0x1323   : > { %10547 = vmatprep.subr.mxu0 %v11092_v1 }
0x1329   : > { %10545 = vmatmul.mubr.f32.vlgmr.msra.gmra.mrb[24].mxu0 %v9104_v59 }
0x132a   : > { %10548 = vmatpush3.msra.mxu0 %v9115_v58  ;;  %10549 = vmatprep.mubr.msk.f32.mxu0 %vm11091_vm0, %v11092_v1 }
0x132b   : > { %10552 = vmatprep.subr.mxu0 %v11092_v1 }
0x1331   : > { %10550 = vmatmul.mubr.f32.vlgmr.msra.gmra.mrb[24].mxu0 %v9102_v55 }
0x1332   : > { %10553 = vmatpush3.msra.mxu0 %v9037_v54  ;;  %10554 = vmatprep.mubr.msk.f32.mxu0 %vm11091_vm0, %v11092_v1 }
0x1339   : > { %10555 = vmatmul.mubr.f32.vlgmr.msra.gmra.mrb[24].mxu0 %v9102_v55 }
0x140c   : > { %v9478_v63 = vpop.f32.mrb[24].mxu0 }
0x140d   : > { %v10556_v2 = vpop.f32.mrb[25].mxu0  ;;  %v9482_v3 = vmul.f32 %v9478_v63, %v9478_v63 }
0x140f   : > { %v9483_v4 = vsel %vm2754_vm9, %v9482_v3, 0.0 }
0x1410   : > { %9484 = vadd.xlane.f32.xlu0 %v9483_v4 }
0x149d   : > { %v9485_v5 = vpop.xlane.xlu0 %9484 }
0x149e   : > { %v9486_v6 = vrot.slane %v9485_v5, 4 }
0x14a0   : > { %v9487_v7 = vadd.f32 %v9486_v6, %v9485_v5 }
0x14a2   : > { %v9488_v8 = vrot.slane %v9487_v7, 2 }
0x14a4   : > { %v9489_v9 = vadd.f32 %v9488_v8, %v9487_v7 }
0x14a6   : > { %v9490_v10 = vrot.slane %v9489_v9, 1 }
0x14a8   : > { %v9491_v11 = vadd.f32 %v9490_v10, %v9489_v9 }
0x14aa   : > { %10805 = vpush %v9491_v11 }
0x14db   : > { %s10806_s18 = spop %10805 }
0x14dc   : > { %v9493_v1 = vstv %s10806_s18 }
0x14dd   : > { %10892 = vrsqrt.f32 %v9493_v1 }
0x14e7   : > { %v10893_v13 = vpop.eup %10892 }
0x14e8   : > { %v9495_v12 = vmul.f32 %v10893_v13, %v9478_v63 }
0x14ea   : > { %9496 = vst.msk [vmem:[%s388_s30] sm:$0xff] %vm2754_vm9, %v9495_v12 }
0x14eb   : > { %11021 = shalt.err (!%p11018_p4)
}
0x14ec   : > { %s11022_s22 = scalar_lea.hbm %s11868_s23, 128  ;;  %s11026_s9 = scalar_lea.hbm %s11946_s21, 256 }
0x14ed   : > { %p11023_p0 = scmp.ne.s32.totalorder %s11868_s23, %s11022_s22  ;;  %p11027_p11 = scmp.lt.u32.totalorder %s11868_s23, %s11946_s21 }
0x14ee   : > { %p11028_p13 = scmp.lt.u32.totalorder %s11026_s9, %s11022_s22  ;;  %p11030_p10 = scmp.lt.u32.totalorder %s11022_s22, %s11868_s23 }
0x14ef   : > { %p11024_p9 = pnand %p11023_p0, %p11299_p5 }
0x14f0   : > { %p11029_p6 = por %p11028_p13, %p11027_p11 }
0x14f1   : > { %p11025_p8 = pneg %p11024_p9 }
0x14f2   : > { %p11031_p3 = por %p11030_p10, %p11029_p6 }
0x14f4   : > { %p11032_p7 = pnand %p11031_p3, %p11025_p8 }
0x14f6   : > { %11035 = shalt.err (!%p11032_p7)
}
0x14f7   : > { %10821 = dma.vmem_to_hbm [thread:$0]  (%p11299_p5), %s11870_s15, 128, %s11868_s23, %s9498_s19  }
0x14f8 PF: > { %s11947_s17 = sld [smem:[#allocation15_spill]]  ;;  %s11948_s26 = sld [smem:[#allocation16_spill]] }
0x14f9   : > { %p11950_p1 = scmp.ge.s32.totalorder %s11082_s12, 2 }
0x14fe   : > { %s9523_s29 = sand.u32 1, %s11947_s17   ;;  %p11949_p12 = scmp.ne.s32.totalorder %s11948_s26, 0 }
0x14ff   : > { %s9524_s13 = scalar_lea.sflag [#allocation4], %s9523_s29 }
0x1500   : > { %p10838_p2 = pnand %p11950_p1, %p11949_p12 }
0x1502   : > { %11065 = dma.done.wait (!%p10838_p2), %s9524_s13, 128  }
0x1503   : > { %11067 = vsyncadd (!%p10838_p2), %s9524_s13, 4294967168  ;;  %p24_p4 = scmp.ge.s32.totalorder %s11285_s14, 4   ;;  %s11951_s30 = smov %s11074_s10 }
0x1504   : > { %s11952_s10 = smov %s11078_s11  ;;  %s11953_s11 = smov %s11295_s16 }
0x1505   : > { %s11954_s12 = smov %s11285_s14  ;;  %26 = sbr.rel (!%p24_p4) target bundleno = 9 (0x9), region = 113 }
0x150c   :  { %9529 = vsyncpa [#allocation3], 1 }
0x150d   :  { %9531 = vsyncpa [#allocation3 + $0x1], 1 }
0x150e   :  { %9532 = vsyncpa [#allocation6], 1 }
0x150f   :  { %9533 = vsyncpa [#allocation9], 1 }
0x1510   :  { %9534 = vsyncpa [#allocation4], 1 }
0x1511   :  { %9536 = vsyncpa [#allocation4 + $0x1], 1 }

</bundles_post_ra>
